<compile_context>
chip_gen: v5e
topology: v5e:2x2
jax: 0.10.0
libtpu: 0.0.40
codegen_flags: <defaults>
</compile_context>

<pallas_src>
import functools

import jax
import jax.numpy as jnp
import numpy as np
from jax.experimental import pallas as pl
from jax.experimental.pallas import tpu as pltpu

LRELU_SLOPE = 0.02


def _apply_activation(acc, activation):
    if activation is None:
        return acc
    if activation == "relu":
        return jnp.maximum(acc, 0.0)
    if activation == "lrelu":
        return jnp.where(acc >= 0.0, acc, LRELU_SLOPE * acc)
    if activation == "elu":
        return jnp.where(acc >= 0.0, acc, jnp.expm1(acc))
    if activation == "tanh":
        return jnp.tanh(acc)
    # TODO(synk): 'prelu' has a learnable slope parameter; not implemented.
    raise NotImplementedError(f"activation {activation!r} not supported")


def _conv_tap_kernel(w_ref, b_ref, x0_ref, x1_ref, x2_ref, o_ref, *, wp, activation):
    """One grid step = one (batch, output-depth-slice) pair.

    w_ref : (27, Cout, Cin)     conv weights, tap-major (dz, dy, dx)
    b_ref : (Cout, 1)           bias (broadcast over lanes)
    x{z}  : (1, 1, Cin, Hp*Wp)  padded input depth slice d+z, rows flattened
    o_ref : (1, 1, Cout, H*Wp)  output depth slice (padded-width row stride)
    """
    cout = o_ref.shape[2]
    lanes = o_ref.shape[3]                       # H * Wp
    xs = (x0_ref, x1_ref, x2_ref)
    acc = jnp.zeros((cout, lanes), jnp.float32)
    t = 0
    for dz in range(3):
        for dy in range(3):
            for dx in range(3):
                off = dy * wp + dx               # static lane shift of this tap's window
                win = xs[dz][0, 0, :, off:off + lanes]       # (Cin, H*Wp)
                acc = acc + jnp.dot(w_ref[t], win,
                                    preferred_element_type=jnp.float32)
                t += 1
    acc = acc + b_ref[...]                       # (Cout, 1) broadcast
    acc = _apply_activation(acc, activation)
    o_ref[0, 0] = acc.astype(o_ref.dtype)


def _depth_tap_map(dz):
    return lambda n, d: (n, d + dz, 0, 0)


def conv3d_block_internal(x, weight, bias, *, activation):
    """3x3x3 conv, stride 1, replicate 'same' padding, bias + activation.

    x:      (N, D, Cin, H, W)   internal channels-third layout
    weight: (Cout, Cin, 3, 3, 3)
    bias:   (Cout,)
    returns (N, D, Cout, H, W)  float32
    """
    n, d, cin, h, w = x.shape
    cout, cin2, kd, kh, kw = weight.shape
    assert cin == cin2, (cin, cin2)
    assert (kd, kh, kw) == (3, 3, 3), "only 3x3x3 kernels supported"

    # Replicate padding.  H gets one extra bottom row so the dy/dx-shifted
    # windows sliced in-kernel never run past the flattened slab; that extra
    # row only ever feeds the (discarded) junk columns of the last output row.
    xp = jnp.pad(x, ((0, 0), (1, 1), (0, 0), (1, 2), (1, 1)), mode="edge")
    dp, hp, wp = d + 2, h + 3, w + 2
    xp = xp.reshape(n, dp, cin, hp * wp)

    lanes = h * wp                               # per-step output lanes (W-padded rows)

    # (Cout, Cin, 3,3,3) -> (27, Cout, Cin), tap-major (dz, dy, dx).
    w_taps = jnp.transpose(weight, (2, 3, 4, 0, 1)).reshape(kd * kh * kw, cout, cin)
    b2 = bias.reshape(cout, 1).astype(jnp.float32)

    # Rough per-step VMEM need (double-buffered in/out blocks) -> explicit limit,
    # kept conservative for v7x's 64 MiB physical VMEM.
    est = (2 * (3 * cin * hp * wp + cout * lanes) * 4
           + 2 * (kd * kh * kw * cout * cin + cout) * 4)
    vlim = int(min(max(4 * est, 32 * 1024 * 1024), 56 * 1024 * 1024))

    out = pl.pallas_call(
        functools.partial(_conv_tap_kernel, wp=wp, activation=activation),
        out_shape=jax.ShapeDtypeStruct((n, d, cout, lanes), jnp.float32),
        grid=(n, d),
        in_specs=[
            pl.BlockSpec((kd * kh * kw, cout, cin), lambda i, j: (0, 0, 0)),
            pl.BlockSpec((cout, 1), lambda i, j: (0, 0)),
            pl.BlockSpec((1, 1, cin, hp * wp), _depth_tap_map(0)),
            pl.BlockSpec((1, 1, cin, hp * wp), _depth_tap_map(1)),
            pl.BlockSpec((1, 1, cin, hp * wp), _depth_tap_map(2)),
        ],
        out_specs=pl.BlockSpec((1, 1, cout, lanes), lambda i, j: (i, j, 0, 0)),
        compiler_params=pltpu.CompilerParams(
            dimension_semantics=("parallel", "parallel"),
            vmem_limit_bytes=vlim),
    )(w_taps, b2, xp, xp, xp)

    # Drop the junk padded columns: (N, D, Cout, H, Wp) -> [..., :W].
    return out.reshape(n, d, cout, h, wp)[..., :w]


def _interp_matrix(in_size, out_size):
    """PyTorch linear upsample (align_corners=False) as a dense (out, in) matrix."""
    i = np.arange(out_size, dtype=np.float64)
    src = (i + 0.5) * (float(in_size) / float(out_size)) - 0.5
    src = np.maximum(src, 0.0)                   # PyTorch clamps negative src to 0
    i0 = np.clip(np.floor(src).astype(np.int64), 0, in_size - 1)
    i1 = np.minimum(i0 + 1, in_size - 1)
    w1 = src - i0
    m = np.zeros((out_size, in_size), dtype=np.float64)
    rows = np.arange(out_size)
    m[rows, i0] += 1.0 - w1
    m[rows, i1] += w1
    return jnp.asarray(m.astype(np.float32))


def trilinear_upsample_internal(x, scale):
    """nn.Upsample(scale, 'trilinear', align_corners=False) on (N, D, C, H, W)."""
    n, d, c, h, w = x.shape
    mw = _interp_matrix(w, int(w * scale))
    mh = _interp_matrix(h, int(h * scale))
    md = _interp_matrix(d, int(d * scale))
    # TODO(synk): for integer scale the per-axis 2-tap stencil could be folded
    # directly into the second conv's input path instead of materialising the
    # scale^3-larger intermediate; kept as JAX glue (one matmul pass per axis).
    x = jnp.einsum("abcde,fe->abcdf", x, mw)
    x = jnp.einsum("abcde,fd->abcfe", x, mh)
    x = jnp.einsum("abcde,fb->afcde", x, md)
    return x


def conv3d_upsample_block(x, w1, b1, w2, b2, *, strides, activation):
    """Forward of Conv3DUpsampleBlock (norm=None) on NCDHW input:
       Conv3DBlock(Cin->Cout) -> [trilinear Upsample x strides] -> Conv3DBlock(Cout->Cout)."""
    y = jnp.transpose(x, (0, 2, 1, 3, 4))        # -> internal (N, D, C, H, W)
    y = conv3d_block_internal(y, w1, b1, activation=activation)
    if strides > 1:
        y = trilinear_upsample_internal(y, strides)
    y = conv3d_block_internal(y, w2, b2, activation=activation)
    return jnp.transpose(y, (0, 2, 1, 3, 4))     # -> (N, C, D, H, W)


# ----------------------------- pure-JAX reference -----------------------------
def _ref_conv3d_block(x, weight, bias, activation):
    kd, kh, kw = weight.shape[2:]
    xp = jnp.pad(x, ((0, 0), (0, 0),
                     (kd // 2, kd // 2), (kh // 2, kh // 2), (kw // 2, kw // 2)),
                 mode="edge")
    y = jax.lax.conv_general_dilated(
        xp, weight, window_strides=(1, 1, 1), padding="VALID",
        dimension_numbers=("NCDHW", "OIDHW", "NCDHW"))
    y = y + bias[None, :, None, None, None]
    return _apply_activation(y, activation)


def _ref_upsample_linear_1d(x, axis, out_size):
    in_size = x.shape[axis]
    if out_size == in_size:
        return x
    i = jnp.arange(out_size, dtype=jnp.float32)
    src = (i + 0.5) * (float(in_size) / float(out_size)) - 0.5
    src = jnp.maximum(src, 0.0)
    i0 = jnp.clip(jnp.floor(src).astype(jnp.int32), 0, in_size - 1)
    i1 = jnp.minimum(i0 + 1, in_size - 1)
    w1 = src - i0.astype(jnp.float32)
    x0 = jnp.take(x, i0, axis=axis)
    x1 = jnp.take(x, i1, axis=axis)
    bshape = [1] * x.ndim
    bshape[axis] = out_size
    w1 = w1.reshape(bshape)
    return x0 * (1.0 - w1) + x1 * w1


def _ref_trilinear_upsample(x, scale_factor):
    _, _, d, h, w = x.shape
    x = _ref_upsample_linear_1d(x, 2, int(d * scale_factor))
    x = _ref_upsample_linear_1d(x, 3, int(h * scale_factor))
    x = _ref_upsample_linear_1d(x, 4, int(w * scale_factor))
    return x


def _reference_forward(x, w1, b1, w2, b2, *, strides, activation):
    y = _ref_conv3d_block(x, w1, b1, activation)
    if strides > 1:
        y = _ref_trilinear_upsample(y, strides)
    return _ref_conv3d_block(y, w2, b2, activation)


if __name__ == "__main__":
    # Conv3DUpsampleBlock(in_channels=4, out_channels=8, strides=2,
    #                     kernel_sizes=3, norm=None, activation='relu')
    N, CIN, COUT, D, H, W, K = 2, 4, 8, 8, 8, 8, 3
    STRIDES, ACT = 2, "relu"

    key = jax.random.PRNGKey(0)
    kx, kw1, kb1, kw2, kb2 = jax.random.split(key, 5)

    x = jax.random.normal(kx, (N, CIN, D, H, W), dtype=jnp.float32)

    # Synthetic kaiming-uniform-scale conv weights; deliberately nonzero bias
    # (the PyTorch init zeroes it, but a nonzero bias exercises the bias path).
    fan1 = CIN * K ** 3
    w1 = jax.random.uniform(kw1, (COUT, CIN, K, K, K), jnp.float32,
                            minval=-1.0, maxval=1.0) * np.sqrt(6.0 / fan1)
    b1 = 0.1 * jax.random.normal(kb1, (COUT,), dtype=jnp.float32)
    fan2 = COUT * K ** 3
    w2 = jax.random.uniform(kw2, (COUT, COUT, K, K, K), jnp.float32,
                            minval=-1.0, maxval=1.0) * np.sqrt(6.0 / fan2)
    b2 = 0.1 * jax.random.normal(kb2, (COUT,), dtype=jnp.float32)

    fwd = jax.jit(functools.partial(conv3d_upsample_block,
                                    strides=STRIDES, activation=ACT))
    out = jax.block_until_ready(fwd(x, w1, b1, w2, b2))

    ref = jax.block_until_ready(
        _reference_forward(x, w1, b1, w2, b2, strides=STRIDES, activation=ACT))

    np.testing.assert_allclose(np.asarray(out), np.asarray(ref),
                               rtol=1e-4, atol=1e-4)
    print("KERNEL_OK")
</pallas_src>

<mosaic_0001>
module attributes {stable_mosaic.version = 11 : i64} {
  func.func @_conv_tap_kernel(%arg0: i32, %arg1: i32, %arg2: memref<27x8x4xf32, #tpu.memory_space<vmem>>, %arg3: memref<8x1xf32, #tpu.memory_space<vmem>>, %arg4: memref<1x1x4x110xf32, #tpu.memory_space<vmem>>, %arg5: memref<1x1x4x110xf32, #tpu.memory_space<vmem>>, %arg6: memref<1x1x4x110xf32, #tpu.memory_space<vmem>>, %arg7: memref<1x1x8x80xf32, #tpu.memory_space<vmem>>) attributes {dimension_semantics = [#tpu.dimension_semantics<parallel>, #tpu.dimension_semantics<parallel>], iteration_bounds = array<i64: 2, 8>, scalar_prefetch = 0 : i64, scratch_operands = 0 : i64, tpu.core_type = #tpu.core_type<tc>, window_params = [{pipeline_mode = #tpu.pipeline_mode<synchronous>, transform_indices = @transform_0, window_bounds = array<i64: 27, 8, 4>}, {pipeline_mode = #tpu.pipeline_mode<synchronous>, transform_indices = @transform_1, window_bounds = array<i64: 8, 1>}, {transform_indices = @transform_2, window_bounds = array<i64: 1, 1, 4, 110>}, {transform_indices = @transform_3, window_bounds = array<i64: 1, 1, 4, 110>}, {transform_indices = @transform_4, window_bounds = array<i64: 1, 1, 4, 110>}, {transform_indices = @transform_5, window_bounds = array<i64: 1, 1, 8, 80>}]} {
    %cst = arith.constant 0.000000e+00 : f32
    %0 = vector.broadcast %cst : f32 to vector<8x80xf32>
    %c0 = arith.constant 0 : index
    %c0_0 = arith.constant 0 : index
    %c0_1 = arith.constant 0 : index
    %c0_2 = arith.constant 0 : index
    %1 = vector.load %arg4[%c0, %c0_0, %c0_1, %c0_2] : memref<1x1x4x110xf32, #tpu.memory_space<vmem>>, vector<1x1x4x80xf32>
    %2 = vector.shape_cast %1 : vector<1x1x4x80xf32> to vector<4x80xf32>
    %c0_3 = arith.constant 0 : index
    %c0_4 = arith.constant 0 : index
    %c0_5 = arith.constant 0 : index
    %3 = vector.load %arg2[%c0_3, %c0_4, %c0_5] : memref<27x8x4xf32, #tpu.memory_space<vmem>>, vector<1x8x4xf32>
    %4 = vector.shape_cast %3 : vector<1x8x4xf32> to vector<8x4xf32>
    %cst_6 = arith.constant dense<0.000000e+00> : vector<8x80xf32>
    %5 = tpu.matmul %4, %2, %cst_6 {dimension_numbers = #tpu.dot_dimension_numbers<[1], [0], [0], [1], [0, 0, 1, 1], [], []>} : vector<8x4xf32>, vector<4x80xf32>, vector<8x80xf32> -> vector<8x80xf32>
    %6 = arith.addf %0, %5 : vector<8x80xf32>
    %c0_7 = arith.constant 0 : index
    %c0_8 = arith.constant 0 : index
    %c0_9 = arith.constant 0 : index
    %c1 = arith.constant 1 : index
    %7 = vector.load %arg4[%c0_7, %c0_8, %c0_9, %c1] : memref<1x1x4x110xf32, #tpu.memory_space<vmem>>, vector<1x1x4x80xf32>
    %8 = vector.shape_cast %7 : vector<1x1x4x80xf32> to vector<4x80xf32>
    %c1_10 = arith.constant 1 : index
    %c0_11 = arith.constant 0 : index
    %c0_12 = arith.constant 0 : index
    %9 = vector.load %arg2[%c1_10, %c0_11, %c0_12] : memref<27x8x4xf32, #tpu.memory_space<vmem>>, vector<1x8x4xf32>
    %10 = vector.shape_cast %9 : vector<1x8x4xf32> to vector<8x4xf32>
    %cst_13 = arith.constant dense<0.000000e+00> : vector<8x80xf32>
    %11 = tpu.matmul %10, %8, %cst_13 {dimension_numbers = #tpu.dot_dimension_numbers<[1], [0], [0], [1], [0, 0, 1, 1], [], []>} : vector<8x4xf32>, vector<4x80xf32>, vector<8x80xf32> -> vector<8x80xf32>
    %12 = arith.addf %6, %11 : vector<8x80xf32>
    %c0_14 = arith.constant 0 : index
    %c0_15 = arith.constant 0 : index
    %c0_16 = arith.constant 0 : index
    %c2 = arith.constant 2 : index
    %13 = vector.load %arg4[%c0_14, %c0_15, %c0_16, %c2] : memref<1x1x4x110xf32, #tpu.memory_space<vmem>>, vector<1x1x4x80xf32>
    %14 = vector.shape_cast %13 : vector<1x1x4x80xf32> to vector<4x80xf32>
    %c2_17 = arith.constant 2 : index
    %c0_18 = arith.constant 0 : index
    %c0_19 = arith.constant 0 : index
    %15 = vector.load %arg2[%c2_17, %c0_18, %c0_19] : memref<27x8x4xf32, #tpu.memory_space<vmem>>, vector<1x8x4xf32>
    %16 = vector.shape_cast %15 : vector<1x8x4xf32> to vector<8x4xf32>
    %cst_20 = arith.constant dense<0.000000e+00> : vector<8x80xf32>
    %17 = tpu.matmul %16, %14, %cst_20 {dimension_numbers = #tpu.dot_dimension_numbers<[1], [0], [0], [1], [0, 0, 1, 1], [], []>} : vector<8x4xf32>, vector<4x80xf32>, vector<8x80xf32> -> vector<8x80xf32>
    %18 = arith.addf %12, %17 : vector<8x80xf32>
    %c0_21 = arith.constant 0 : index
    %c0_22 = arith.constant 0 : index
    %c0_23 = arith.constant 0 : index
    %c10 = arith.constant 10 : index
    %19 = vector.load %arg4[%c0_21, %c0_22, %c0_23, %c10] : memref<1x1x4x110xf32, #tpu.memory_space<vmem>>, vector<1x1x4x80xf32>
    %20 = vector.shape_cast %19 : vector<1x1x4x80xf32> to vector<4x80xf32>
    %c3 = arith.constant 3 : index
    %c0_24 = arith.constant 0 : index
    %c0_25 = arith.constant 0 : index
    %21 = vector.load %arg2[%c3, %c0_24, %c0_25] : memref<27x8x4xf32, #tpu.memory_space<vmem>>, vector<1x8x4xf32>
    %22 = vector.shape_cast %21 : vector<1x8x4xf32> to vector<8x4xf32>
    %cst_26 = arith.constant dense<0.000000e+00> : vector<8x80xf32>
    %23 = tpu.matmul %22, %20, %cst_26 {dimension_numbers = #tpu.dot_dimension_numbers<[1], [0], [0], [1], [0, 0, 1, 1], [], []>} : vector<8x4xf32>, vector<4x80xf32>, vector<8x80xf32> -> vector<8x80xf32>
    %24 = arith.addf %18, %23 : vector<8x80xf32>
    %c0_27 = arith.constant 0 : index
    %c0_28 = arith.constant 0 : index
    %c0_29 = arith.constant 0 : index
    %c11 = arith.constant 11 : index
    %25 = vector.load %arg4[%c0_27, %c0_28, %c0_29, %c11] : memref<1x1x4x110xf32, #tpu.memory_space<vmem>>, vector<1x1x4x80xf32>
    %26 = vector.shape_cast %25 : vector<1x1x4x80xf32> to vector<4x80xf32>
    %c4 = arith.constant 4 : index
    %c0_30 = arith.constant 0 : index
    %c0_31 = arith.constant 0 : index
    %27 = vector.load %arg2[%c4, %c0_30, %c0_31] : memref<27x8x4xf32, #tpu.memory_space<vmem>>, vector<1x8x4xf32>
    %28 = vector.shape_cast %27 : vector<1x8x4xf32> to vector<8x4xf32>
    %cst_32 = arith.constant dense<0.000000e+00> : vector<8x80xf32>
    %29 = tpu.matmul %28, %26, %cst_32 {dimension_numbers = #tpu.dot_dimension_numbers<[1], [0], [0], [1], [0, 0, 1, 1], [], []>} : vector<8x4xf32>, vector<4x80xf32>, vector<8x80xf32> -> vector<8x80xf32>
    %30 = arith.addf %24, %29 : vector<8x80xf32>
    %c0_33 = arith.constant 0 : index
    %c0_34 = arith.constant 0 : index
    %c0_35 = arith.constant 0 : index
    %c12 = arith.constant 12 : index
    %31 = vector.load %arg4[%c0_33, %c0_34, %c0_35, %c12] : memref<1x1x4x110xf32, #tpu.memory_space<vmem>>, vector<1x1x4x80xf32>
    %32 = vector.shape_cast %31 : vector<1x1x4x80xf32> to vector<4x80xf32>
    %c5 = arith.constant 5 : index
    %c0_36 = arith.constant 0 : index
    %c0_37 = arith.constant 0 : index
    %33 = vector.load %arg2[%c5, %c0_36, %c0_37] : memref<27x8x4xf32, #tpu.memory_space<vmem>>, vector<1x8x4xf32>
    %34 = vector.shape_cast %33 : vector<1x8x4xf32> to vector<8x4xf32>
    %cst_38 = arith.constant dense<0.000000e+00> : vector<8x80xf32>
    %35 = tpu.matmul %34, %32, %cst_38 {dimension_numbers = #tpu.dot_dimension_numbers<[1], [0], [0], [1], [0, 0, 1, 1], [], []>} : vector<8x4xf32>, vector<4x80xf32>, vector<8x80xf32> -> vector<8x80xf32>
    %36 = arith.addf %30, %35 : vector<8x80xf32>
    %c0_39 = arith.constant 0 : index
    %c0_40 = arith.constant 0 : index
    %c0_41 = arith.constant 0 : index
    %c20 = arith.constant 20 : index
    %37 = vector.load %arg4[%c0_39, %c0_40, %c0_41, %c20] : memref<1x1x4x110xf32, #tpu.memory_space<vmem>>, vector<1x1x4x80xf32>
    %38 = vector.shape_cast %37 : vector<1x1x4x80xf32> to vector<4x80xf32>
    %c6 = arith.constant 6 : index
    %c0_42 = arith.constant 0 : index
    %c0_43 = arith.constant 0 : index
    %39 = vector.load %arg2[%c6, %c0_42, %c0_43] : memref<27x8x4xf32, #tpu.memory_space<vmem>>, vector<1x8x4xf32>
    %40 = vector.shape_cast %39 : vector<1x8x4xf32> to vector<8x4xf32>
    %cst_44 = arith.constant dense<0.000000e+00> : vector<8x80xf32>
    %41 = tpu.matmul %40, %38, %cst_44 {dimension_numbers = #tpu.dot_dimension_numbers<[1], [0], [0], [1], [0, 0, 1, 1], [], []>} : vector<8x4xf32>, vector<4x80xf32>, vector<8x80xf32> -> vector<8x80xf32>
    %42 = arith.addf %36, %41 : vector<8x80xf32>
    %c0_45 = arith.constant 0 : index
    %c0_46 = arith.constant 0 : index
    %c0_47 = arith.constant 0 : index
    %c21 = arith.constant 21 : index
    %43 = vector.load %arg4[%c0_45, %c0_46, %c0_47, %c21] : memref<1x1x4x110xf32, #tpu.memory_space<vmem>>, vector<1x1x4x80xf32>
    %44 = vector.shape_cast %43 : vector<1x1x4x80xf32> to vector<4x80xf32>
    %c7 = arith.constant 7 : index
    %c0_48 = arith.constant 0 : index
    %c0_49 = arith.constant 0 : index
    %45 = vector.load %arg2[%c7, %c0_48, %c0_49] : memref<27x8x4xf32, #tpu.memory_space<vmem>>, vector<1x8x4xf32>
    %46 = vector.shape_cast %45 : vector<1x8x4xf32> to vector<8x4xf32>
    %cst_50 = arith.constant dense<0.000000e+00> : vector<8x80xf32>
    %47 = tpu.matmul %46, %44, %cst_50 {dimension_numbers = #tpu.dot_dimension_numbers<[1], [0], [0], [1], [0, 0, 1, 1], [], []>} : vector<8x4xf32>, vector<4x80xf32>, vector<8x80xf32> -> vector<8x80xf32>
    %48 = arith.addf %42, %47 : vector<8x80xf32>
    %c0_51 = arith.constant 0 : index
    %c0_52 = arith.constant 0 : index
    %c0_53 = arith.constant 0 : index
    %c22 = arith.constant 22 : index
    %49 = vector.load %arg4[%c0_51, %c0_52, %c0_53, %c22] : memref<1x1x4x110xf32, #tpu.memory_space<vmem>>, vector<1x1x4x80xf32>
    %50 = vector.shape_cast %49 : vector<1x1x4x80xf32> to vector<4x80xf32>
    %c8 = arith.constant 8 : index
    %c0_54 = arith.constant 0 : index
    %c0_55 = arith.constant 0 : index
    %51 = vector.load %arg2[%c8, %c0_54, %c0_55] : memref<27x8x4xf32, #tpu.memory_space<vmem>>, vector<1x8x4xf32>
    %52 = vector.shape_cast %51 : vector<1x8x4xf32> to vector<8x4xf32>
    %cst_56 = arith.constant dense<0.000000e+00> : vector<8x80xf32>
    %53 = tpu.matmul %52, %50, %cst_56 {dimension_numbers = #tpu.dot_dimension_numbers<[1], [0], [0], [1], [0, 0, 1, 1], [], []>} : vector<8x4xf32>, vector<4x80xf32>, vector<8x80xf32> -> vector<8x80xf32>
    %54 = arith.addf %48, %53 : vector<8x80xf32>
    %c0_57 = arith.constant 0 : index
    %c0_58 = arith.constant 0 : index
    %c0_59 = arith.constant 0 : index
    %c0_60 = arith.constant 0 : index
    %55 = vector.load %arg5[%c0_57, %c0_58, %c0_59, %c0_60] : memref<1x1x4x110xf32, #tpu.memory_space<vmem>>, vector<1x1x4x80xf32>
    %56 = vector.shape_cast %55 : vector<1x1x4x80xf32> to vector<4x80xf32>
    %c9 = arith.constant 9 : index
    %c0_61 = arith.constant 0 : index
    %c0_62 = arith.constant 0 : index
    %57 = vector.load %arg2[%c9, %c0_61, %c0_62] : memref<27x8x4xf32, #tpu.memory_space<vmem>>, vector<1x8x4xf32>
    %58 = vector.shape_cast %57 : vector<1x8x4xf32> to vector<8x4xf32>
    %cst_63 = arith.constant dense<0.000000e+00> : vector<8x80xf32>
    %59 = tpu.matmul %58, %56, %cst_63 {dimension_numbers = #tpu.dot_dimension_numbers<[1], [0], [0], [1], [0, 0, 1, 1], [], []>} : vector<8x4xf32>, vector<4x80xf32>, vector<8x80xf32> -> vector<8x80xf32>
    %60 = arith.addf %54, %59 : vector<8x80xf32>
    %c0_64 = arith.constant 0 : index
    %c0_65 = arith.constant 0 : index
    %c0_66 = arith.constant 0 : index
    %c1_67 = arith.constant 1 : index
    %61 = vector.load %arg5[%c0_64, %c0_65, %c0_66, %c1_67] : memref<1x1x4x110xf32, #tpu.memory_space<vmem>>, vector<1x1x4x80xf32>
    %62 = vector.shape_cast %61 : vector<1x1x4x80xf32> to vector<4x80xf32>
    %c10_68 = arith.constant 10 : index
    %c0_69 = arith.constant 0 : index
    %c0_70 = arith.constant 0 : index
    %63 = vector.load %arg2[%c10_68, %c0_69, %c0_70] : memref<27x8x4xf32, #tpu.memory_space<vmem>>, vector<1x8x4xf32>
    %64 = vector.shape_cast %63 : vector<1x8x4xf32> to vector<8x4xf32>
    %cst_71 = arith.constant dense<0.000000e+00> : vector<8x80xf32>
    %65 = tpu.matmul %64, %62, %cst_71 {dimension_numbers = #tpu.dot_dimension_numbers<[1], [0], [0], [1], [0, 0, 1, 1], [], []>} : vector<8x4xf32>, vector<4x80xf32>, vector<8x80xf32> -> vector<8x80xf32>
    %66 = arith.addf %60, %65 : vector<8x80xf32>
    %c0_72 = arith.constant 0 : index
    %c0_73 = arith.constant 0 : index
    %c0_74 = arith.constant 0 : index
    %c2_75 = arith.constant 2 : index
    %67 = vector.load %arg5[%c0_72, %c0_73, %c0_74, %c2_75] : memref<1x1x4x110xf32, #tpu.memory_space<vmem>>, vector<1x1x4x80xf32>
    %68 = vector.shape_cast %67 : vector<1x1x4x80xf32> to vector<4x80xf32>
    %c11_76 = arith.constant 11 : index
    %c0_77 = arith.constant 0 : index
    %c0_78 = arith.constant 0 : index
    %69 = vector.load %arg2[%c11_76, %c0_77, %c0_78] : memref<27x8x4xf32, #tpu.memory_space<vmem>>, vector<1x8x4xf32>
    %70 = vector.shape_cast %69 : vector<1x8x4xf32> to vector<8x4xf32>
    %cst_79 = arith.constant dense<0.000000e+00> : vector<8x80xf32>
    %71 = tpu.matmul %70, %68, %cst_79 {dimension_numbers = #tpu.dot_dimension_numbers<[1], [0], [0], [1], [0, 0, 1, 1], [], []>} : vector<8x4xf32>, vector<4x80xf32>, vector<8x80xf32> -> vector<8x80xf32>
    %72 = arith.addf %66, %71 : vector<8x80xf32>
    %c0_80 = arith.constant 0 : index
    %c0_81 = arith.constant 0 : index
    %c0_82 = arith.constant 0 : index
    %c10_83 = arith.constant 10 : index
    %73 = vector.load %arg5[%c0_80, %c0_81, %c0_82, %c10_83] : memref<1x1x4x110xf32, #tpu.memory_space<vmem>>, vector<1x1x4x80xf32>
    %74 = vector.shape_cast %73 : vector<1x1x4x80xf32> to vector<4x80xf32>
    %c12_84 = arith.constant 12 : index
    %c0_85 = arith.constant 0 : index
    %c0_86 = arith.constant 0 : index
    %75 = vector.load %arg2[%c12_84, %c0_85, %c0_86] : memref<27x8x4xf32, #tpu.memory_space<vmem>>, vector<1x8x4xf32>
    %76 = vector.shape_cast %75 : vector<1x8x4xf32> to vector<8x4xf32>
    %cst_87 = arith.constant dense<0.000000e+00> : vector<8x80xf32>
    %77 = tpu.matmul %76, %74, %cst_87 {dimension_numbers = #tpu.dot_dimension_numbers<[1], [0], [0], [1], [0, 0, 1, 1], [], []>} : vector<8x4xf32>, vector<4x80xf32>, vector<8x80xf32> -> vector<8x80xf32>
    %78 = arith.addf %72, %77 : vector<8x80xf32>
    %c0_88 = arith.constant 0 : index
    %c0_89 = arith.constant 0 : index
    %c0_90 = arith.constant 0 : index
    %c11_91 = arith.constant 11 : index
    %79 = vector.load %arg5[%c0_88, %c0_89, %c0_90, %c11_91] : memref<1x1x4x110xf32, #tpu.memory_space<vmem>>, vector<1x1x4x80xf32>
    %80 = vector.shape_cast %79 : vector<1x1x4x80xf32> to vector<4x80xf32>
    %c13 = arith.constant 13 : index
    %c0_92 = arith.constant 0 : index
    %c0_93 = arith.constant 0 : index
    %81 = vector.load %arg2[%c13, %c0_92, %c0_93] : memref<27x8x4xf32, #tpu.memory_space<vmem>>, vector<1x8x4xf32>
    %82 = vector.shape_cast %81 : vector<1x8x4xf32> to vector<8x4xf32>
    %cst_94 = arith.constant dense<0.000000e+00> : vector<8x80xf32>
    %83 = tpu.matmul %82, %80, %cst_94 {dimension_numbers = #tpu.dot_dimension_numbers<[1], [0], [0], [1], [0, 0, 1, 1], [], []>} : vector<8x4xf32>, vector<4x80xf32>, vector<8x80xf32> -> vector<8x80xf32>
    %84 = arith.addf %78, %83 : vector<8x80xf32>
    %c0_95 = arith.constant 0 : index
    %c0_96 = arith.constant 0 : index
    %c0_97 = arith.constant 0 : index
    %c12_98 = arith.constant 12 : index
    %85 = vector.load %arg5[%c0_95, %c0_96, %c0_97, %c12_98] : memref<1x1x4x110xf32, #tpu.memory_space<vmem>>, vector<1x1x4x80xf32>
    %86 = vector.shape_cast %85 : vector<1x1x4x80xf32> to vector<4x80xf32>
    %c14 = arith.constant 14 : index
    %c0_99 = arith.constant 0 : index
    %c0_100 = arith.constant 0 : index
    %87 = vector.load %arg2[%c14, %c0_99, %c0_100] : memref<27x8x4xf32, #tpu.memory_space<vmem>>, vector<1x8x4xf32>
    %88 = vector.shape_cast %87 : vector<1x8x4xf32> to vector<8x4xf32>
    %cst_101 = arith.constant dense<0.000000e+00> : vector<8x80xf32>
    %89 = tpu.matmul %88, %86, %cst_101 {dimension_numbers = #tpu.dot_dimension_numbers<[1], [0], [0], [1], [0, 0, 1, 1], [], []>} : vector<8x4xf32>, vector<4x80xf32>, vector<8x80xf32> -> vector<8x80xf32>
    %90 = arith.addf %84, %89 : vector<8x80xf32>
    %c0_102 = arith.constant 0 : index
    %c0_103 = arith.constant 0 : index
    %c0_104 = arith.constant 0 : index
    %c20_105 = arith.constant 20 : index
    %91 = vector.load %arg5[%c0_102, %c0_103, %c0_104, %c20_105] : memref<1x1x4x110xf32, #tpu.memory_space<vmem>>, vector<1x1x4x80xf32>
    %92 = vector.shape_cast %91 : vector<1x1x4x80xf32> to vector<4x80xf32>
    %c15 = arith.constant 15 : index
    %c0_106 = arith.constant 0 : index
    %c0_107 = arith.constant 0 : index
    %93 = vector.load %arg2[%c15, %c0_106, %c0_107] : memref<27x8x4xf32, #tpu.memory_space<vmem>>, vector<1x8x4xf32>
    %94 = vector.shape_cast %93 : vector<1x8x4xf32> to vector<8x4xf32>
    %cst_108 = arith.constant dense<0.000000e+00> : vector<8x80xf32>
    %95 = tpu.matmul %94, %92, %cst_108 {dimension_numbers = #tpu.dot_dimension_numbers<[1], [0], [0], [1], [0, 0, 1, 1], [], []>} : vector<8x4xf32>, vector<4x80xf32>, vector<8x80xf32> -> vector<8x80xf32>
    %96 = arith.addf %90, %95 : vector<8x80xf32>
    %c0_109 = arith.constant 0 : index
    %c0_110 = arith.constant 0 : index
    %c0_111 = arith.constant 0 : index
    %c21_112 = arith.constant 21 : index
    %97 = vector.load %arg5[%c0_109, %c0_110, %c0_111, %c21_112] : memref<1x1x4x110xf32, #tpu.memory_space<vmem>>, vector<1x1x4x80xf32>
    %98 = vector.shape_cast %97 : vector<1x1x4x80xf32> to vector<4x80xf32>
    %c16 = arith.constant 16 : index
    %c0_113 = arith.constant 0 : index
    %c0_114 = arith.constant 0 : index
    %99 = vector.load %arg2[%c16, %c0_113, %c0_114] : memref<27x8x4xf32, #tpu.memory_space<vmem>>, vector<1x8x4xf32>
    %100 = vector.shape_cast %99 : vector<1x8x4xf32> to vector<8x4xf32>
    %cst_115 = arith.constant dense<0.000000e+00> : vector<8x80xf32>
    %101 = tpu.matmul %100, %98, %cst_115 {dimension_numbers = #tpu.dot_dimension_numbers<[1], [0], [0], [1], [0, 0, 1, 1], [], []>} : vector<8x4xf32>, vector<4x80xf32>, vector<8x80xf32> -> vector<8x80xf32>
    %102 = arith.addf %96, %101 : vector<8x80xf32>
    %c0_116 = arith.constant 0 : index
    %c0_117 = arith.constant 0 : index
    %c0_118 = arith.constant 0 : index
    %c22_119 = arith.constant 22 : index
    %103 = vector.load %arg5[%c0_116, %c0_117, %c0_118, %c22_119] : memref<1x1x4x110xf32, #tpu.memory_space<vmem>>, vector<1x1x4x80xf32>
    %104 = vector.shape_cast %103 : vector<1x1x4x80xf32> to vector<4x80xf32>
    %c17 = arith.constant 17 : index
    %c0_120 = arith.constant 0 : index
    %c0_121 = arith.constant 0 : index
    %105 = vector.load %arg2[%c17, %c0_120, %c0_121] : memref<27x8x4xf32, #tpu.memory_space<vmem>>, vector<1x8x4xf32>
    %106 = vector.shape_cast %105 : vector<1x8x4xf32> to vector<8x4xf32>
    %cst_122 = arith.constant dense<0.000000e+00> : vector<8x80xf32>
    %107 = tpu.matmul %106, %104, %cst_122 {dimension_numbers = #tpu.dot_dimension_numbers<[1], [0], [0], [1], [0, 0, 1, 1], [], []>} : vector<8x4xf32>, vector<4x80xf32>, vector<8x80xf32> -> vector<8x80xf32>
    %108 = arith.addf %102, %107 : vector<8x80xf32>
    %c0_123 = arith.constant 0 : index
    %c0_124 = arith.constant 0 : index
    %c0_125 = arith.constant 0 : index
    %c0_126 = arith.constant 0 : index
    %109 = vector.load %arg6[%c0_123, %c0_124, %c0_125, %c0_126] : memref<1x1x4x110xf32, #tpu.memory_space<vmem>>, vector<1x1x4x80xf32>
    %110 = vector.shape_cast %109 : vector<1x1x4x80xf32> to vector<4x80xf32>
    %c18 = arith.constant 18 : index
    %c0_127 = arith.constant 0 : index
    %c0_128 = arith.constant 0 : index
    %111 = vector.load %arg2[%c18, %c0_127, %c0_128] : memref<27x8x4xf32, #tpu.memory_space<vmem>>, vector<1x8x4xf32>
    %112 = vector.shape_cast %111 : vector<1x8x4xf32> to vector<8x4xf32>
    %cst_129 = arith.constant dense<0.000000e+00> : vector<8x80xf32>
    %113 = tpu.matmul %112, %110, %cst_129 {dimension_numbers = #tpu.dot_dimension_numbers<[1], [0], [0], [1], [0, 0, 1, 1], [], []>} : vector<8x4xf32>, vector<4x80xf32>, vector<8x80xf32> -> vector<8x80xf32>
    %114 = arith.addf %108, %113 : vector<8x80xf32>
    %c0_130 = arith.constant 0 : index
    %c0_131 = arith.constant 0 : index
    %c0_132 = arith.constant 0 : index
    %c1_133 = arith.constant 1 : index
    %115 = vector.load %arg6[%c0_130, %c0_131, %c0_132, %c1_133] : memref<1x1x4x110xf32, #tpu.memory_space<vmem>>, vector<1x1x4x80xf32>
    %116 = vector.shape_cast %115 : vector<1x1x4x80xf32> to vector<4x80xf32>
    %c19 = arith.constant 19 : index
    %c0_134 = arith.constant 0 : index
    %c0_135 = arith.constant 0 : index
    %117 = vector.load %arg2[%c19, %c0_134, %c0_135] : memref<27x8x4xf32, #tpu.memory_space<vmem>>, vector<1x8x4xf32>
    %118 = vector.shape_cast %117 : vector<1x8x4xf32> to vector<8x4xf32>
    %cst_136 = arith.constant dense<0.000000e+00> : vector<8x80xf32>
    %119 = tpu.matmul %118, %116, %cst_136 {dimension_numbers = #tpu.dot_dimension_numbers<[1], [0], [0], [1], [0, 0, 1, 1], [], []>} : vector<8x4xf32>, vector<4x80xf32>, vector<8x80xf32> -> vector<8x80xf32>
    %120 = arith.addf %114, %119 : vector<8x80xf32>
    %c0_137 = arith.constant 0 : index
    %c0_138 = arith.constant 0 : index
    %c0_139 = arith.constant 0 : index
    %c2_140 = arith.constant 2 : index
    %121 = vector.load %arg6[%c0_137, %c0_138, %c0_139, %c2_140] : memref<1x1x4x110xf32, #tpu.memory_space<vmem>>, vector<1x1x4x80xf32>
    %122 = vector.shape_cast %121 : vector<1x1x4x80xf32> to vector<4x80xf32>
    %c20_141 = arith.constant 20 : index
    %c0_142 = arith.constant 0 : index
    %c0_143 = arith.constant 0 : index
    %123 = vector.load %arg2[%c20_141, %c0_142, %c0_143] : memref<27x8x4xf32, #tpu.memory_space<vmem>>, vector<1x8x4xf32>
    %124 = vector.shape_cast %123 : vector<1x8x4xf32> to vector<8x4xf32>
    %cst_144 = arith.constant dense<0.000000e+00> : vector<8x80xf32>
    %125 = tpu.matmul %124, %122, %cst_144 {dimension_numbers = #tpu.dot_dimension_numbers<[1], [0], [0], [1], [0, 0, 1, 1], [], []>} : vector<8x4xf32>, vector<4x80xf32>, vector<8x80xf32> -> vector<8x80xf32>
    %126 = arith.addf %120, %125 : vector<8x80xf32>
    %c0_145 = arith.constant 0 : index
    %c0_146 = arith.constant 0 : index
    %c0_147 = arith.constant 0 : index
    %c10_148 = arith.constant 10 : index
    %127 = vector.load %arg6[%c0_145, %c0_146, %c0_147, %c10_148] : memref<1x1x4x110xf32, #tpu.memory_space<vmem>>, vector<1x1x4x80xf32>
    %128 = vector.shape_cast %127 : vector<1x1x4x80xf32> to vector<4x80xf32>
    %c21_149 = arith.constant 21 : index
    %c0_150 = arith.constant 0 : index
    %c0_151 = arith.constant 0 : index
    %129 = vector.load %arg2[%c21_149, %c0_150, %c0_151] : memref<27x8x4xf32, #tpu.memory_space<vmem>>, vector<1x8x4xf32>
    %130 = vector.shape_cast %129 : vector<1x8x4xf32> to vector<8x4xf32>
    %cst_152 = arith.constant dense<0.000000e+00> : vector<8x80xf32>
    %131 = tpu.matmul %130, %128, %cst_152 {dimension_numbers = #tpu.dot_dimension_numbers<[1], [0], [0], [1], [0, 0, 1, 1], [], []>} : vector<8x4xf32>, vector<4x80xf32>, vector<8x80xf32> -> vector<8x80xf32>
    %132 = arith.addf %126, %131 : vector<8x80xf32>
    %c0_153 = arith.constant 0 : index
    %c0_154 = arith.constant 0 : index
    %c0_155 = arith.constant 0 : index
    %c11_156 = arith.constant 11 : index
    %133 = vector.load %arg6[%c0_153, %c0_154, %c0_155, %c11_156] : memref<1x1x4x110xf32, #tpu.memory_space<vmem>>, vector<1x1x4x80xf32>
    %134 = vector.shape_cast %133 : vector<1x1x4x80xf32> to vector<4x80xf32>
    %c22_157 = arith.constant 22 : index
    %c0_158 = arith.constant 0 : index
    %c0_159 = arith.constant 0 : index
    %135 = vector.load %arg2[%c22_157, %c0_158, %c0_159] : memref<27x8x4xf32, #tpu.memory_space<vmem>>, vector<1x8x4xf32>
    %136 = vector.shape_cast %135 : vector<1x8x4xf32> to vector<8x4xf32>
    %cst_160 = arith.constant dense<0.000000e+00> : vector<8x80xf32>
    %137 = tpu.matmul %136, %134, %cst_160 {dimension_numbers = #tpu.dot_dimension_numbers<[1], [0], [0], [1], [0, 0, 1, 1], [], []>} : vector<8x4xf32>, vector<4x80xf32>, vector<8x80xf32> -> vector<8x80xf32>
    %138 = arith.addf %132, %137 : vector<8x80xf32>
    %c0_161 = arith.constant 0 : index
    %c0_162 = arith.constant 0 : index
    %c0_163 = arith.constant 0 : index
    %c12_164 = arith.constant 12 : index
    %139 = vector.load %arg6[%c0_161, %c0_162, %c0_163, %c12_164] : memref<1x1x4x110xf32, #tpu.memory_space<vmem>>, vector<1x1x4x80xf32>
    %140 = vector.shape_cast %139 : vector<1x1x4x80xf32> to vector<4x80xf32>
    %c23 = arith.constant 23 : index
    %c0_165 = arith.constant 0 : index
    %c0_166 = arith.constant 0 : index
    %141 = vector.load %arg2[%c23, %c0_165, %c0_166] : memref<27x8x4xf32, #tpu.memory_space<vmem>>, vector<1x8x4xf32>
    %142 = vector.shape_cast %141 : vector<1x8x4xf32> to vector<8x4xf32>
    %cst_167 = arith.constant dense<0.000000e+00> : vector<8x80xf32>
    %143 = tpu.matmul %142, %140, %cst_167 {dimension_numbers = #tpu.dot_dimension_numbers<[1], [0], [0], [1], [0, 0, 1, 1], [], []>} : vector<8x4xf32>, vector<4x80xf32>, vector<8x80xf32> -> vector<8x80xf32>
    %144 = arith.addf %138, %143 : vector<8x80xf32>
    %c0_168 = arith.constant 0 : index
    %c0_169 = arith.constant 0 : index
    %c0_170 = arith.constant 0 : index
    %c20_171 = arith.constant 20 : index
    %145 = vector.load %arg6[%c0_168, %c0_169, %c0_170, %c20_171] : memref<1x1x4x110xf32, #tpu.memory_space<vmem>>, vector<1x1x4x80xf32>
    %146 = vector.shape_cast %145 : vector<1x1x4x80xf32> to vector<4x80xf32>
    %c24 = arith.constant 24 : index
    %c0_172 = arith.constant 0 : index
    %c0_173 = arith.constant 0 : index
    %147 = vector.load %arg2[%c24, %c0_172, %c0_173] : memref<27x8x4xf32, #tpu.memory_space<vmem>>, vector<1x8x4xf32>
    %148 = vector.shape_cast %147 : vector<1x8x4xf32> to vector<8x4xf32>
    %cst_174 = arith.constant dense<0.000000e+00> : vector<8x80xf32>
    %149 = tpu.matmul %148, %146, %cst_174 {dimension_numbers = #tpu.dot_dimension_numbers<[1], [0], [0], [1], [0, 0, 1, 1], [], []>} : vector<8x4xf32>, vector<4x80xf32>, vector<8x80xf32> -> vector<8x80xf32>
    %150 = arith.addf %144, %149 : vector<8x80xf32>
    %c0_175 = arith.constant 0 : index
    %c0_176 = arith.constant 0 : index
    %c0_177 = arith.constant 0 : index
    %c21_178 = arith.constant 21 : index
    %151 = vector.load %arg6[%c0_175, %c0_176, %c0_177, %c21_178] : memref<1x1x4x110xf32, #tpu.memory_space<vmem>>, vector<1x1x4x80xf32>
    %152 = vector.shape_cast %151 : vector<1x1x4x80xf32> to vector<4x80xf32>
    %c25 = arith.constant 25 : index
    %c0_179 = arith.constant 0 : index
    %c0_180 = arith.constant 0 : index
    %153 = vector.load %arg2[%c25, %c0_179, %c0_180] : memref<27x8x4xf32, #tpu.memory_space<vmem>>, vector<1x8x4xf32>
    %154 = vector.shape_cast %153 : vector<1x8x4xf32> to vector<8x4xf32>
    %cst_181 = arith.constant dense<0.000000e+00> : vector<8x80xf32>
    %155 = tpu.matmul %154, %152, %cst_181 {dimension_numbers = #tpu.dot_dimension_numbers<[1], [0], [0], [1], [0, 0, 1, 1], [], []>} : vector<8x4xf32>, vector<4x80xf32>, vector<8x80xf32> -> vector<8x80xf32>
    %156 = arith.addf %150, %155 : vector<8x80xf32>
    %c0_182 = arith.constant 0 : index
    %c0_183 = arith.constant 0 : index
    %c0_184 = arith.constant 0 : index
    %c22_185 = arith.constant 22 : index
    %157 = vector.load %arg6[%c0_182, %c0_183, %c0_184, %c22_185] : memref<1x1x4x110xf32, #tpu.memory_space<vmem>>, vector<1x1x4x80xf32>
    %158 = vector.shape_cast %157 : vector<1x1x4x80xf32> to vector<4x80xf32>
    %c26 = arith.constant 26 : index
    %c0_186 = arith.constant 0 : index
    %c0_187 = arith.constant 0 : index
    %159 = vector.load %arg2[%c26, %c0_186, %c0_187] : memref<27x8x4xf32, #tpu.memory_space<vmem>>, vector<1x8x4xf32>
    %160 = vector.shape_cast %159 : vector<1x8x4xf32> to vector<8x4xf32>
    %cst_188 = arith.constant dense<0.000000e+00> : vector<8x80xf32>
    %161 = tpu.matmul %160, %158, %cst_188 {dimension_numbers = #tpu.dot_dimension_numbers<[1], [0], [0], [1], [0, 0, 1, 1], [], []>} : vector<8x4xf32>, vector<4x80xf32>, vector<8x80xf32> -> vector<8x80xf32>
    %162 = arith.addf %156, %161 : vector<8x80xf32>
    %c0_189 = arith.constant 0 : index
    %c0_190 = arith.constant 0 : index
    %163 = vector.load %arg3[%c0_189, %c0_190] : memref<8x1xf32, #tpu.memory_space<vmem>>, vector<8x1xf32>
    %164 = vector.broadcast %163 : vector<8x1xf32> to vector<8x80xf32>
    %165 = arith.addf %162, %164 : vector<8x80xf32>
    %cst_191 = arith.constant 0.000000e+00 : f32
    %166 = vector.broadcast %cst_191 : f32 to vector<8x80xf32>
    %167 = arith.maximumf %165, %166 : vector<8x80xf32>
    %c0_192 = arith.constant 0 : index
    %c0_193 = arith.constant 0 : index
    %c0_194 = arith.constant 0 : index
    %c0_195 = arith.constant 0 : index
    %168 = vector.load %arg7[%c0_192, %c0_193, %c0_194, %c0_195] : memref<1x1x8x80xf32, #tpu.memory_space<vmem>>, vector<1x1x8x80xf32>
    %169 = vector.shape_cast %168 : vector<1x1x8x80xf32> to vector<8x80xf32>
    %170 = vector.shape_cast %167 : vector<8x80xf32> to vector<1x1x8x80xf32>
    tpu.vector_store %arg7[%c0_192, %c0_193, %c0_194, %c0_195], %170 {strides = array<i32>} : memref<1x1x8x80xf32, #tpu.memory_space<vmem>>, vector<1x1x8x80xf32>,
    return
  }
  func.func @transform_0(%arg0: i32, %arg1: i32) -> (i32, i32, i32) {
    %c0_i32 = arith.constant 0 : i32
    %c0_i32_0 = arith.constant 0 : i32
    %c0_i32_1 = arith.constant 0 : i32
    %c0_i32_2 = arith.constant 0 : i32
    return %c0_i32, %c0_i32_0, %c0_i32_1 : i32, i32, i32
  }
  func.func @transform_1(%arg0: i32, %arg1: i32) -> (i32, i32) {
    %c0_i32 = arith.constant 0 : i32
    %c0_i32_0 = arith.constant 0 : i32
    %c0_i32_1 = arith.constant 0 : i32
    return %c0_i32, %c0_i32_0 : i32, i32
  }
  func.func @transform_2(%arg0: i32, %arg1: i32) -> (i32, i32, i32, i32) {
    %c0_i32 = arith.constant 0 : i32
    %0 = arith.addi %arg1, %c0_i32 : i32
    %c0_i32_0 = arith.constant 0 : i32
    %c0_i32_1 = arith.constant 0 : i32
    %c0_i32_2 = arith.constant 0 : i32
    return %arg0, %0, %c0_i32_0, %c0_i32_1 : i32, i32, i32, i32
  }
  func.func @transform_3(%arg0: i32, %arg1: i32) -> (i32, i32, i32, i32) {
    %c1_i32 = arith.constant 1 : i32
    %0 = arith.addi %arg1, %c1_i32 : i32
    %c0_i32 = arith.constant 0 : i32
    %c0_i32_0 = arith.constant 0 : i32
    %c0_i32_1 = arith.constant 0 : i32
    return %arg0, %0, %c0_i32, %c0_i32_0 : i32, i32, i32, i32
  }
  func.func @transform_4(%arg0: i32, %arg1: i32) -> (i32, i32, i32, i32) {
    %c2_i32 = arith.constant 2 : i32
    %0 = arith.addi %arg1, %c2_i32 : i32
    %c0_i32 = arith.constant 0 : i32
    %c0_i32_0 = arith.constant 0 : i32
    %c0_i32_1 = arith.constant 0 : i32
    return %arg0, %0, %c0_i32, %c0_i32_0 : i32, i32, i32, i32
  }
  func.func @transform_5(%arg0: i32, %arg1: i32) -> (i32, i32, i32, i32) {
    %c0_i32 = arith.constant 0 : i32
    %c0_i32_0 = arith.constant 0 : i32
    %c0_i32_1 = arith.constant 0 : i32
    return %arg0, %arg1, %c0_i32, %c0_i32_0 : i32, i32, i32, i32
  }
}

module attributes {stable_mosaic.version = 11 : i64} {
  func.func @_conv_tap_kernel(%arg0: i32, %arg1: i32, %arg2: memref<27x8x8xf32, #tpu.memory_space<vmem>>, %arg3: memref<8x1xf32, #tpu.memory_space<vmem>>, %arg4: memref<1x1x8x342xf32, #tpu.memory_space<vmem>>, %arg5: memref<1x1x8x342xf32, #tpu.memory_space<vmem>>, %arg6: memref<1x1x8x342xf32, #tpu.memory_space<vmem>>, %arg7: memref<1x1x8x288xf32, #tpu.memory_space<vmem>>) attributes {dimension_semantics = [#tpu.dimension_semantics<parallel>, #tpu.dimension_semantics<parallel>], iteration_bounds = array<i64: 2, 16>, scalar_prefetch = 0 : i64, scratch_operands = 0 : i64, tpu.core_type = #tpu.core_type<tc>, window_params = [{pipeline_mode = #tpu.pipeline_mode<synchronous>, transform_indices = @transform_0, window_bounds = array<i64: 27, 8, 8>}, {pipeline_mode = #tpu.pipeline_mode<synchronous>, transform_indices = @transform_1, window_bounds = array<i64: 8, 1>}, {transform_indices = @transform_2, window_bounds = array<i64: 1, 1, 8, 342>}, {transform_indices = @transform_3, window_bounds = array<i64: 1, 1, 8, 342>}, {transform_indices = @transform_4, window_bounds = array<i64: 1, 1, 8, 342>}, {transform_indices = @transform_5, window_bounds = array<i64: 1, 1, 8, 288>}]} {
    %cst = arith.constant 0.000000e+00 : f32
    %0 = vector.broadcast %cst : f32 to vector<8x288xf32>
    %c0 = arith.constant 0 : index
    %c0_0 = arith.constant 0 : index
    %c0_1 = arith.constant 0 : index
    %c0_2 = arith.constant 0 : index
    %1 = vector.load %arg4[%c0, %c0_0, %c0_1, %c0_2] : memref<1x1x8x342xf32, #tpu.memory_space<vmem>>, vector<1x1x8x288xf32>
    %2 = vector.shape_cast %1 : vector<1x1x8x288xf32> to vector<8x288xf32>
    %c0_3 = arith.constant 0 : index
    %c0_4 = arith.constant 0 : index
    %c0_5 = arith.constant 0 : index
    %3 = vector.load %arg2[%c0_3, %c0_4, %c0_5] : memref<27x8x8xf32, #tpu.memory_space<vmem>>, vector<1x8x8xf32>
    %4 = vector.shape_cast %3 : vector<1x8x8xf32> to vector<8x8xf32>
    %cst_6 = arith.constant dense<0.000000e+00> : vector<8x288xf32>
    %5 = tpu.matmul %4, %2, %cst_6 {dimension_numbers = #tpu.dot_dimension_numbers<[1], [0], [0], [1], [0, 0, 1, 1], [], []>} : vector<8x8xf32>, vector<8x288xf32>, vector<8x288xf32> -> vector<8x288xf32>
    %6 = arith.addf %0, %5 : vector<8x288xf32>
    %c0_7 = arith.constant 0 : index
    %c0_8 = arith.constant 0 : index
    %c0_9 = arith.constant 0 : index
    %c1 = arith.constant 1 : index
    %7 = vector.load %arg4[%c0_7, %c0_8, %c0_9, %c1] : memref<1x1x8x342xf32, #tpu.memory_space<vmem>>, vector<1x1x8x288xf32>
    %8 = vector.shape_cast %7 : vector<1x1x8x288xf32> to vector<8x288xf32>
    %c1_10 = arith.constant 1 : index
    %c0_11 = arith.constant 0 : index
    %c0_12 = arith.constant 0 : index
    %9 = vector.load %arg2[%c1_10, %c0_11, %c0_12] : memref<27x8x8xf32, #tpu.memory_space<vmem>>, vector<1x8x8xf32>
    %10 = vector.shape_cast %9 : vector<1x8x8xf32> to vector<8x8xf32>
    %cst_13 = arith.constant dense<0.000000e+00> : vector<8x288xf32>
    %11 = tpu.matmul %10, %8, %cst_13 {dimension_numbers = #tpu.dot_dimension_numbers<[1], [0], [0], [1], [0, 0, 1, 1], [], []>} : vector<8x8xf32>, vector<8x288xf32>, vector<8x288xf32> -> vector<8x288xf32>
    %12 = arith.addf %6, %11 : vector<8x288xf32>
    %c0_14 = arith.constant 0 : index
    %c0_15 = arith.constant 0 : index
    %c0_16 = arith.constant 0 : index
    %c2 = arith.constant 2 : index
    %13 = vector.load %arg4[%c0_14, %c0_15, %c0_16, %c2] : memref<1x1x8x342xf32, #tpu.memory_space<vmem>>, vector<1x1x8x288xf32>
    %14 = vector.shape_cast %13 : vector<1x1x8x288xf32> to vector<8x288xf32>
    %c2_17 = arith.constant 2 : index
    %c0_18 = arith.constant 0 : index
    %c0_19 = arith.constant 0 : index
    %15 = vector.load %arg2[%c2_17, %c0_18, %c0_19] : memref<27x8x8xf32, #tpu.memory_space<vmem>>, vector<1x8x8xf32>
    %16 = vector.shape_cast %15 : vector<1x8x8xf32> to vector<8x8xf32>
    %cst_20 = arith.constant dense<0.000000e+00> : vector<8x288xf32>
    %17 = tpu.matmul %16, %14, %cst_20 {dimension_numbers = #tpu.dot_dimension_numbers<[1], [0], [0], [1], [0, 0, 1, 1], [], []>} : vector<8x8xf32>, vector<8x288xf32>, vector<8x288xf32> -> vector<8x288xf32>
    %18 = arith.addf %12, %17 : vector<8x288xf32>
    %c0_21 = arith.constant 0 : index
    %c0_22 = arith.constant 0 : index
    %c0_23 = arith.constant 0 : index
    %c18 = arith.constant 18 : index
    %19 = vector.load %arg4[%c0_21, %c0_22, %c0_23, %c18] : memref<1x1x8x342xf32, #tpu.memory_space<vmem>>, vector<1x1x8x288xf32>
    %20 = vector.shape_cast %19 : vector<1x1x8x288xf32> to vector<8x288xf32>
    %c3 = arith.constant 3 : index
    %c0_24 = arith.constant 0 : index
    %c0_25 = arith.constant 0 : index
    %21 = vector.load %arg2[%c3, %c0_24, %c0_25] : memref<27x8x8xf32, #tpu.memory_space<vmem>>, vector<1x8x8xf32>
    %22 = vector.shape_cast %21 : vector<1x8x8xf32> to vector<8x8xf32>
    %cst_26 = arith.constant dense<0.000000e+00> : vector<8x288xf32>
    %23 = tpu.matmul %22, %20, %cst_26 {dimension_numbers = #tpu.dot_dimension_numbers<[1], [0], [0], [1], [0, 0, 1, 1], [], []>} : vector<8x8xf32>, vector<8x288xf32>, vector<8x288xf32> -> vector<8x288xf32>
    %24 = arith.addf %18, %23 : vector<8x288xf32>
    %c0_27 = arith.constant 0 : index
    %c0_28 = arith.constant 0 : index
    %c0_29 = arith.constant 0 : index
    %c19 = arith.constant 19 : index
    %25 = vector.load %arg4[%c0_27, %c0_28, %c0_29, %c19] : memref<1x1x8x342xf32, #tpu.memory_space<vmem>>, vector<1x1x8x288xf32>
    %26 = vector.shape_cast %25 : vector<1x1x8x288xf32> to vector<8x288xf32>
    %c4 = arith.constant 4 : index
    %c0_30 = arith.constant 0 : index
    %c0_31 = arith.constant 0 : index
    %27 = vector.load %arg2[%c4, %c0_30, %c0_31] : memref<27x8x8xf32, #tpu.memory_space<vmem>>, vector<1x8x8xf32>
    %28 = vector.shape_cast %27 : vector<1x8x8xf32> to vector<8x8xf32>
    %cst_32 = arith.constant dense<0.000000e+00> : vector<8x288xf32>
    %29 = tpu.matmul %28, %26, %cst_32 {dimension_numbers = #tpu.dot_dimension_numbers<[1], [0], [0], [1], [0, 0, 1, 1], [], []>} : vector<8x8xf32>, vector<8x288xf32>, vector<8x288xf32> -> vector<8x288xf32>
    %30 = arith.addf %24, %29 : vector<8x288xf32>
    %c0_33 = arith.constant 0 : index
    %c0_34 = arith.constant 0 : index
    %c0_35 = arith.constant 0 : index
    %c20 = arith.constant 20 : index
    %31 = vector.load %arg4[%c0_33, %c0_34, %c0_35, %c20] : memref<1x1x8x342xf32, #tpu.memory_space<vmem>>, vector<1x1x8x288xf32>
    %32 = vector.shape_cast %31 : vector<1x1x8x288xf32> to vector<8x288xf32>
    %c5 = arith.constant 5 : index
    %c0_36 = arith.constant 0 : index
    %c0_37 = arith.constant 0 : index
    %33 = vector.load %arg2[%c5, %c0_36, %c0_37] : memref<27x8x8xf32, #tpu.memory_space<vmem>>, vector<1x8x8xf32>
    %34 = vector.shape_cast %33 : vector<1x8x8xf32> to vector<8x8xf32>
    %cst_38 = arith.constant dense<0.000000e+00> : vector<8x288xf32>
    %35 = tpu.matmul %34, %32, %cst_38 {dimension_numbers = #tpu.dot_dimension_numbers<[1], [0], [0], [1], [0, 0, 1, 1], [], []>} : vector<8x8xf32>, vector<8x288xf32>, vector<8x288xf32> -> vector<8x288xf32>
    %36 = arith.addf %30, %35 : vector<8x288xf32>
    %c0_39 = arith.constant 0 : index
    %c0_40 = arith.constant 0 : index
    %c0_41 = arith.constant 0 : index
    %c36 = arith.constant 36 : index
    %37 = vector.load %arg4[%c0_39, %c0_40, %c0_41, %c36] : memref<1x1x8x342xf32, #tpu.memory_space<vmem>>, vector<1x1x8x288xf32>
    %38 = vector.shape_cast %37 : vector<1x1x8x288xf32> to vector<8x288xf32>
    %c6 = arith.constant 6 : index
    %c0_42 = arith.constant 0 : index
    %c0_43 = arith.constant 0 : index
    %39 = vector.load %arg2[%c6, %c0_42, %c0_43] : memref<27x8x8xf32, #tpu.memory_space<vmem>>, vector<1x8x8xf32>
    %40 = vector.shape_cast %39 : vector<1x8x8xf32> to vector<8x8xf32>
    %cst_44 = arith.constant dense<0.000000e+00> : vector<8x288xf32>
    %41 = tpu.matmul %40, %38, %cst_44 {dimension_numbers = #tpu.dot_dimension_numbers<[1], [0], [0], [1], [0, 0, 1, 1], [], []>} : vector<8x8xf32>, vector<8x288xf32>, vector<8x288xf32> -> vector<8x288xf32>
    %42 = arith.addf %36, %41 : vector<8x288xf32>
    %c0_45 = arith.constant 0 : index
    %c0_46 = arith.constant 0 : index
    %c0_47 = arith.constant 0 : index
    %c37 = arith.constant 37 : index
    %43 = vector.load %arg4[%c0_45, %c0_46, %c0_47, %c37] : memref<1x1x8x342xf32, #tpu.memory_space<vmem>>, vector<1x1x8x288xf32>
    %44 = vector.shape_cast %43 : vector<1x1x8x288xf32> to vector<8x288xf32>
    %c7 = arith.constant 7 : index
    %c0_48 = arith.constant 0 : index
    %c0_49 = arith.constant 0 : index
    %45 = vector.load %arg2[%c7, %c0_48, %c0_49] : memref<27x8x8xf32, #tpu.memory_space<vmem>>, vector<1x8x8xf32>
    %46 = vector.shape_cast %45 : vector<1x8x8xf32> to vector<8x8xf32>
    %cst_50 = arith.constant dense<0.000000e+00> : vector<8x288xf32>
    %47 = tpu.matmul %46, %44, %cst_50 {dimension_numbers = #tpu.dot_dimension_numbers<[1], [0], [0], [1], [0, 0, 1, 1], [], []>} : vector<8x8xf32>, vector<8x288xf32>, vector<8x288xf32> -> vector<8x288xf32>
    %48 = arith.addf %42, %47 : vector<8x288xf32>
    %c0_51 = arith.constant 0 : index
    %c0_52 = arith.constant 0 : index
    %c0_53 = arith.constant 0 : index
    %c38 = arith.constant 38 : index
    %49 = vector.load %arg4[%c0_51, %c0_52, %c0_53, %c38] : memref<1x1x8x342xf32, #tpu.memory_space<vmem>>, vector<1x1x8x288xf32>
    %50 = vector.shape_cast %49 : vector<1x1x8x288xf32> to vector<8x288xf32>
    %c8 = arith.constant 8 : index
    %c0_54 = arith.constant 0 : index
    %c0_55 = arith.constant 0 : index
    %51 = vector.load %arg2[%c8, %c0_54, %c0_55] : memref<27x8x8xf32, #tpu.memory_space<vmem>>, vector<1x8x8xf32>
    %52 = vector.shape_cast %51 : vector<1x8x8xf32> to vector<8x8xf32>
    %cst_56 = arith.constant dense<0.000000e+00> : vector<8x288xf32>
    %53 = tpu.matmul %52, %50, %cst_56 {dimension_numbers = #tpu.dot_dimension_numbers<[1], [0], [0], [1], [0, 0, 1, 1], [], []>} : vector<8x8xf32>, vector<8x288xf32>, vector<8x288xf32> -> vector<8x288xf32>
    %54 = arith.addf %48, %53 : vector<8x288xf32>
    %c0_57 = arith.constant 0 : index
    %c0_58 = arith.constant 0 : index
    %c0_59 = arith.constant 0 : index
    %c0_60 = arith.constant 0 : index
    %55 = vector.load %arg5[%c0_57, %c0_58, %c0_59, %c0_60] : memref<1x1x8x342xf32, #tpu.memory_space<vmem>>, vector<1x1x8x288xf32>
    %56 = vector.shape_cast %55 : vector<1x1x8x288xf32> to vector<8x288xf32>
    %c9 = arith.constant 9 : index
    %c0_61 = arith.constant 0 : index
    %c0_62 = arith.constant 0 : index
    %57 = vector.load %arg2[%c9, %c0_61, %c0_62] : memref<27x8x8xf32, #tpu.memory_space<vmem>>, vector<1x8x8xf32>
    %58 = vector.shape_cast %57 : vector<1x8x8xf32> to vector<8x8xf32>
    %cst_63 = arith.constant dense<0.000000e+00> : vector<8x288xf32>
    %59 = tpu.matmul %58, %56, %cst_63 {dimension_numbers = #tpu.dot_dimension_numbers<[1], [0], [0], [1], [0, 0, 1, 1], [], []>} : vector<8x8xf32>, vector<8x288xf32>, vector<8x288xf32> -> vector<8x288xf32>
    %60 = arith.addf %54, %59 : vector<8x288xf32>
    %c0_64 = arith.constant 0 : index
    %c0_65 = arith.constant 0 : index
    %c0_66 = arith.constant 0 : index
    %c1_67 = arith.constant 1 : index
    %61 = vector.load %arg5[%c0_64, %c0_65, %c0_66, %c1_67] : memref<1x1x8x342xf32, #tpu.memory_space<vmem>>, vector<1x1x8x288xf32>
    %62 = vector.shape_cast %61 : vector<1x1x8x288xf32> to vector<8x288xf32>
    %c10 = arith.constant 10 : index
    %c0_68 = arith.constant 0 : index
    %c0_69 = arith.constant 0 : index
    %63 = vector.load %arg2[%c10, %c0_68, %c0_69] : memref<27x8x8xf32, #tpu.memory_space<vmem>>, vector<1x8x8xf32>
    %64 = vector.shape_cast %63 : vector<1x8x8xf32> to vector<8x8xf32>
    %cst_70 = arith.constant dense<0.000000e+00> : vector<8x288xf32>
    %65 = tpu.matmul %64, %62, %cst_70 {dimension_numbers = #tpu.dot_dimension_numbers<[1], [0], [0], [1], [0, 0, 1, 1], [], []>} : vector<8x8xf32>, vector<8x288xf32>, vector<8x288xf32> -> vector<8x288xf32>
    %66 = arith.addf %60, %65 : vector<8x288xf32>
    %c0_71 = arith.constant 0 : index
    %c0_72 = arith.constant 0 : index
    %c0_73 = arith.constant 0 : index
    %c2_74 = arith.constant 2 : index
    %67 = vector.load %arg5[%c0_71, %c0_72, %c0_73, %c2_74] : memref<1x1x8x342xf32, #tpu.memory_space<vmem>>, vector<1x1x8x288xf32>
    %68 = vector.shape_cast %67 : vector<1x1x8x288xf32> to vector<8x288xf32>
    %c11 = arith.constant 11 : index
    %c0_75 = arith.constant 0 : index
    %c0_76 = arith.constant 0 : index
    %69 = vector.load %arg2[%c11, %c0_75, %c0_76] : memref<27x8x8xf32, #tpu.memory_space<vmem>>, vector<1x8x8xf32>
    %70 = vector.shape_cast %69 : vector<1x8x8xf32> to vector<8x8xf32>
    %cst_77 = arith.constant dense<0.000000e+00> : vector<8x288xf32>
    %71 = tpu.matmul %70, %68, %cst_77 {dimension_numbers = #tpu.dot_dimension_numbers<[1], [0], [0], [1], [0, 0, 1, 1], [], []>} : vector<8x8xf32>, vector<8x288xf32>, vector<8x288xf32> -> vector<8x288xf32>
    %72 = arith.addf %66, %71 : vector<8x288xf32>
    %c0_78 = arith.constant 0 : index
    %c0_79 = arith.constant 0 : index
    %c0_80 = arith.constant 0 : index
    %c18_81 = arith.constant 18 : index
    %73 = vector.load %arg5[%c0_78, %c0_79, %c0_80, %c18_81] : memref<1x1x8x342xf32, #tpu.memory_space<vmem>>, vector<1x1x8x288xf32>
    %74 = vector.shape_cast %73 : vector<1x1x8x288xf32> to vector<8x288xf32>
    %c12 = arith.constant 12 : index
    %c0_82 = arith.constant 0 : index
    %c0_83 = arith.constant 0 : index
    %75 = vector.load %arg2[%c12, %c0_82, %c0_83] : memref<27x8x8xf32, #tpu.memory_space<vmem>>, vector<1x8x8xf32>
    %76 = vector.shape_cast %75 : vector<1x8x8xf32> to vector<8x8xf32>
    %cst_84 = arith.constant dense<0.000000e+00> : vector<8x288xf32>
    %77 = tpu.matmul %76, %74, %cst_84 {dimension_numbers = #tpu.dot_dimension_numbers<[1], [0], [0], [1], [0, 0, 1, 1], [], []>} : vector<8x8xf32>, vector<8x288xf32>, vector<8x288xf32> -> vector<8x288xf32>
    %78 = arith.addf %72, %77 : vector<8x288xf32>
    %c0_85 = arith.constant 0 : index
    %c0_86 = arith.constant 0 : index
    %c0_87 = arith.constant 0 : index
    %c19_88 = arith.constant 19 : index
    %79 = vector.load %arg5[%c0_85, %c0_86, %c0_87, %c19_88] : memref<1x1x8x342xf32, #tpu.memory_space<vmem>>, vector<1x1x8x288xf32>
    %80 = vector.shape_cast %79 : vector<1x1x8x288xf32> to vector<8x288xf32>
    %c13 = arith.constant 13 : index
    %c0_89 = arith.constant 0 : index
    %c0_90 = arith.constant 0 : index
    %81 = vector.load %arg2[%c13, %c0_89, %c0_90] : memref<27x8x8xf32, #tpu.memory_space<vmem>>, vector<1x8x8xf32>
    %82 = vector.shape_cast %81 : vector<1x8x8xf32> to vector<8x8xf32>
    %cst_91 = arith.constant dense<0.000000e+00> : vector<8x288xf32>
    %83 = tpu.matmul %82, %80, %cst_91 {dimension_numbers = #tpu.dot_dimension_numbers<[1], [0], [0], [1], [0, 0, 1, 1], [], []>} : vector<8x8xf32>, vector<8x288xf32>, vector<8x288xf32> -> vector<8x288xf32>
    %84 = arith.addf %78, %83 : vector<8x288xf32>
    %c0_92 = arith.constant 0 : index
    %c0_93 = arith.constant 0 : index
    %c0_94 = arith.constant 0 : index
    %c20_95 = arith.constant 20 : index
    %85 = vector.load %arg5[%c0_92, %c0_93, %c0_94, %c20_95] : memref<1x1x8x342xf32, #tpu.memory_space<vmem>>, vector<1x1x8x288xf32>
    %86 = vector.shape_cast %85 : vector<1x1x8x288xf32> to vector<8x288xf32>
    %c14 = arith.constant 14 : index
    %c0_96 = arith.constant 0 : index
    %c0_97 = arith.constant 0 : index
    %87 = vector.load %arg2[%c14, %c0_96, %c0_97] : memref<27x8x8xf32, #tpu.memory_space<vmem>>, vector<1x8x8xf32>
    %88 = vector.shape_cast %87 : vector<1x8x8xf32> to vector<8x8xf32>
    %cst_98 = arith.constant dense<0.000000e+00> : vector<8x288xf32>
    %89 = tpu.matmul %88, %86, %cst_98 {dimension_numbers = #tpu.dot_dimension_numbers<[1], [0], [0], [1], [0, 0, 1, 1], [], []>} : vector<8x8xf32>, vector<8x288xf32>, vector<8x288xf32> -> vector<8x288xf32>
    %90 = arith.addf %84, %89 : vector<8x288xf32>
    %c0_99 = arith.constant 0 : index
    %c0_100 = arith.constant 0 : index
    %c0_101 = arith.constant 0 : index
    %c36_102 = arith.constant 36 : index
    %91 = vector.load %arg5[%c0_99, %c0_100, %c0_101, %c36_102] : memref<1x1x8x342xf32, #tpu.memory_space<vmem>>, vector<1x1x8x288xf32>
    %92 = vector.shape_cast %91 : vector<1x1x8x288xf32> to vector<8x288xf32>
    %c15 = arith.constant 15 : index
    %c0_103 = arith.constant 0 : index
    %c0_104 = arith.constant 0 : index
    %93 = vector.load %arg2[%c15, %c0_103, %c0_104] : memref<27x8x8xf32, #tpu.memory_space<vmem>>, vector<1x8x8xf32>
    %94 = vector.shape_cast %93 : vector<1x8x8xf32> to vector<8x8xf32>
    %cst_105 = arith.constant dense<0.000000e+00> : vector<8x288xf32>
    %95 = tpu.matmul %94, %92, %cst_105 {dimension_numbers = #tpu.dot_dimension_numbers<[1], [0], [0], [1], [0, 0, 1, 1], [], []>} : vector<8x8xf32>, vector<8x288xf32>, vector<8x288xf32> -> vector<8x288xf32>
    %96 = arith.addf %90, %95 : vector<8x288xf32>
    %c0_106 = arith.constant 0 : index
    %c0_107 = arith.constant 0 : index
    %c0_108 = arith.constant 0 : index
    %c37_109 = arith.constant 37 : index
    %97 = vector.load %arg5[%c0_106, %c0_107, %c0_108, %c37_109] : memref<1x1x8x342xf32, #tpu.memory_space<vmem>>, vector<1x1x8x288xf32>
    %98 = vector.shape_cast %97 : vector<1x1x8x288xf32> to vector<8x288xf32>
    %c16 = arith.constant 16 : index
    %c0_110 = arith.constant 0 : index
    %c0_111 = arith.constant 0 : index
    %99 = vector.load %arg2[%c16, %c0_110, %c0_111] : memref<27x8x8xf32, #tpu.memory_space<vmem>>, vector<1x8x8xf32>
    %100 = vector.shape_cast %99 : vector<1x8x8xf32> to vector<8x8xf32>
    %cst_112 = arith.constant dense<0.000000e+00> : vector<8x288xf32>
    %101 = tpu.matmul %100, %98, %cst_112 {dimension_numbers = #tpu.dot_dimension_numbers<[1], [0], [0], [1], [0, 0, 1, 1], [], []>} : vector<8x8xf32>, vector<8x288xf32>, vector<8x288xf32> -> vector<8x288xf32>
    %102 = arith.addf %96, %101 : vector<8x288xf32>
    %c0_113 = arith.constant 0 : index
    %c0_114 = arith.constant 0 : index
    %c0_115 = arith.constant 0 : index
    %c38_116 = arith.constant 38 : index
    %103 = vector.load %arg5[%c0_113, %c0_114, %c0_115, %c38_116] : memref<1x1x8x342xf32, #tpu.memory_space<vmem>>, vector<1x1x8x288xf32>
    %104 = vector.shape_cast %103 : vector<1x1x8x288xf32> to vector<8x288xf32>
    %c17 = arith.constant 17 : index
    %c0_117 = arith.constant 0 : index
    %c0_118 = arith.constant 0 : index
    %105 = vector.load %arg2[%c17, %c0_117, %c0_118] : memref<27x8x8xf32, #tpu.memory_space<vmem>>, vector<1x8x8xf32>
    %106 = vector.shape_cast %105 : vector<1x8x8xf32> to vector<8x8xf32>
    %cst_119 = arith.constant dense<0.000000e+00> : vector<8x288xf32>
    %107 = tpu.matmul %106, %104, %cst_119 {dimension_numbers = #tpu.dot_dimension_numbers<[1], [0], [0], [1], [0, 0, 1, 1], [], []>} : vector<8x8xf32>, vector<8x288xf32>, vector<8x288xf32> -> vector<8x288xf32>
    %108 = arith.addf %102, %107 : vector<8x288xf32>
    %c0_120 = arith.constant 0 : index
    %c0_121 = arith.constant 0 : index
    %c0_122 = arith.constant 0 : index
    %c0_123 = arith.constant 0 : index
    %109 = vector.load %arg6[%c0_120, %c0_121, %c0_122, %c0_123] : memref<1x1x8x342xf32, #tpu.memory_space<vmem>>, vector<1x1x8x288xf32>
    %110 = vector.shape_cast %109 : vector<1x1x8x288xf32> to vector<8x288xf32>
    %c18_124 = arith.constant 18 : index
    %c0_125 = arith.constant 0 : index
    %c0_126 = arith.constant 0 : index
    %111 = vector.load %arg2[%c18_124, %c0_125, %c0_126] : memref<27x8x8xf32, #tpu.memory_space<vmem>>, vector<1x8x8xf32>
    %112 = vector.shape_cast %111 : vector<1x8x8xf32> to vector<8x8xf32>
    %cst_127 = arith.constant dense<0.000000e+00> : vector<8x288xf32>
    %113 = tpu.matmul %112, %110, %cst_127 {dimension_numbers = #tpu.dot_dimension_numbers<[1], [0], [0], [1], [0, 0, 1, 1], [], []>} : vector<8x8xf32>, vector<8x288xf32>, vector<8x288xf32> -> vector<8x288xf32>
    %114 = arith.addf %108, %113 : vector<8x288xf32>
    %c0_128 = arith.constant 0 : index
    %c0_129 = arith.constant 0 : index
    %c0_130 = arith.constant 0 : index
    %c1_131 = arith.constant 1 : index
    %115 = vector.load %arg6[%c0_128, %c0_129, %c0_130, %c1_131] : memref<1x1x8x342xf32, #tpu.memory_space<vmem>>, vector<1x1x8x288xf32>
    %116 = vector.shape_cast %115 : vector<1x1x8x288xf32> to vector<8x288xf32>
    %c19_132 = arith.constant 19 : index
    %c0_133 = arith.constant 0 : index
    %c0_134 = arith.constant 0 : index
    %117 = vector.load %arg2[%c19_132, %c0_133, %c0_134] : memref<27x8x8xf32, #tpu.memory_space<vmem>>, vector<1x8x8xf32>
    %118 = vector.shape_cast %117 : vector<1x8x8xf32> to vector<8x8xf32>
    %cst_135 = arith.constant dense<0.000000e+00> : vector<8x288xf32>
    %119 = tpu.matmul %118, %116, %cst_135 {dimension_numbers = #tpu.dot_dimension_numbers<[1], [0], [0], [1], [0, 0, 1, 1], [], []>} : vector<8x8xf32>, vector<8x288xf32>, vector<8x288xf32> -> vector<8x288xf32>
    %120 = arith.addf %114, %119 : vector<8x288xf32>
    %c0_136 = arith.constant 0 : index
    %c0_137 = arith.constant 0 : index
    %c0_138 = arith.constant 0 : index
    %c2_139 = arith.constant 2 : index
    %121 = vector.load %arg6[%c0_136, %c0_137, %c0_138, %c2_139] : memref<1x1x8x342xf32, #tpu.memory_space<vmem>>, vector<1x1x8x288xf32>
    %122 = vector.shape_cast %121 : vector<1x1x8x288xf32> to vector<8x288xf32>
    %c20_140 = arith.constant 20 : index
    %c0_141 = arith.constant 0 : index
    %c0_142 = arith.constant 0 : index
    %123 = vector.load %arg2[%c20_140, %c0_141, %c0_142] : memref<27x8x8xf32, #tpu.memory_space<vmem>>, vector<1x8x8xf32>
    %124 = vector.shape_cast %123 : vector<1x8x8xf32> to vector<8x8xf32>
    %cst_143 = arith.constant dense<0.000000e+00> : vector<8x288xf32>
    %125 = tpu.matmul %124, %122, %cst_143 {dimension_numbers = #tpu.dot_dimension_numbers<[1], [0], [0], [1], [0, 0, 1, 1], [], []>} : vector<8x8xf32>, vector<8x288xf32>, vector<8x288xf32> -> vector<8x288xf32>
    %126 = arith.addf %120, %125 : vector<8x288xf32>
    %c0_144 = arith.constant 0 : index
    %c0_145 = arith.constant 0 : index
    %c0_146 = arith.constant 0 : index
    %c18_147 = arith.constant 18 : index
    %127 = vector.load %arg6[%c0_144, %c0_145, %c0_146, %c18_147] : memref<1x1x8x342xf32, #tpu.memory_space<vmem>>, vector<1x1x8x288xf32>
    %128 = vector.shape_cast %127 : vector<1x1x8x288xf32> to vector<8x288xf32>
    %c21 = arith.constant 21 : index
    %c0_148 = arith.constant 0 : index
    %c0_149 = arith.constant 0 : index
    %129 = vector.load %arg2[%c21, %c0_148, %c0_149] : memref<27x8x8xf32, #tpu.memory_space<vmem>>, vector<1x8x8xf32>
    %130 = vector.shape_cast %129 : vector<1x8x8xf32> to vector<8x8xf32>
    %cst_150 = arith.constant dense<0.000000e+00> : vector<8x288xf32>
    %131 = tpu.matmul %130, %128, %cst_150 {dimension_numbers = #tpu.dot_dimension_numbers<[1], [0], [0], [1], [0, 0, 1, 1], [], []>} : vector<8x8xf32>, vector<8x288xf32>, vector<8x288xf32> -> vector<8x288xf32>
    %132 = arith.addf %126, %131 : vector<8x288xf32>
    %c0_151 = arith.constant 0 : index
    %c0_152 = arith.constant 0 : index
    %c0_153 = arith.constant 0 : index
    %c19_154 = arith.constant 19 : index
    %133 = vector.load %arg6[%c0_151, %c0_152, %c0_153, %c19_154] : memref<1x1x8x342xf32, #tpu.memory_space<vmem>>, vector<1x1x8x288xf32>
    %134 = vector.shape_cast %133 : vector<1x1x8x288xf32> to vector<8x288xf32>
    %c22 = arith.constant 22 : index
    %c0_155 = arith.constant 0 : index
    %c0_156 = arith.constant 0 : index
    %135 = vector.load %arg2[%c22, %c0_155, %c0_156] : memref<27x8x8xf32, #tpu.memory_space<vmem>>, vector<1x8x8xf32>
    %136 = vector.shape_cast %135 : vector<1x8x8xf32> to vector<8x8xf32>
    %cst_157 = arith.constant dense<0.000000e+00> : vector<8x288xf32>
    %137 = tpu.matmul %136, %134, %cst_157 {dimension_numbers = #tpu.dot_dimension_numbers<[1], [0], [0], [1], [0, 0, 1, 1], [], []>} : vector<8x8xf32>, vector<8x288xf32>, vector<8x288xf32> -> vector<8x288xf32>
    %138 = arith.addf %132, %137 : vector<8x288xf32>
    %c0_158 = arith.constant 0 : index
    %c0_159 = arith.constant 0 : index
    %c0_160 = arith.constant 0 : index
    %c20_161 = arith.constant 20 : index
    %139 = vector.load %arg6[%c0_158, %c0_159, %c0_160, %c20_161] : memref<1x1x8x342xf32, #tpu.memory_space<vmem>>, vector<1x1x8x288xf32>
    %140 = vector.shape_cast %139 : vector<1x1x8x288xf32> to vector<8x288xf32>
    %c23 = arith.constant 23 : index
    %c0_162 = arith.constant 0 : index
    %c0_163 = arith.constant 0 : index
    %141 = vector.load %arg2[%c23, %c0_162, %c0_163] : memref<27x8x8xf32, #tpu.memory_space<vmem>>, vector<1x8x8xf32>
    %142 = vector.shape_cast %141 : vector<1x8x8xf32> to vector<8x8xf32>
    %cst_164 = arith.constant dense<0.000000e+00> : vector<8x288xf32>
    %143 = tpu.matmul %142, %140, %cst_164 {dimension_numbers = #tpu.dot_dimension_numbers<[1], [0], [0], [1], [0, 0, 1, 1], [], []>} : vector<8x8xf32>, vector<8x288xf32>, vector<8x288xf32> -> vector<8x288xf32>
    %144 = arith.addf %138, %143 : vector<8x288xf32>
    %c0_165 = arith.constant 0 : index
    %c0_166 = arith.constant 0 : index
    %c0_167 = arith.constant 0 : index
    %c36_168 = arith.constant 36 : index
    %145 = vector.load %arg6[%c0_165, %c0_166, %c0_167, %c36_168] : memref<1x1x8x342xf32, #tpu.memory_space<vmem>>, vector<1x1x8x288xf32>
    %146 = vector.shape_cast %145 : vector<1x1x8x288xf32> to vector<8x288xf32>
    %c24 = arith.constant 24 : index
    %c0_169 = arith.constant 0 : index
    %c0_170 = arith.constant 0 : index
    %147 = vector.load %arg2[%c24, %c0_169, %c0_170] : memref<27x8x8xf32, #tpu.memory_space<vmem>>, vector<1x8x8xf32>
    %148 = vector.shape_cast %147 : vector<1x8x8xf32> to vector<8x8xf32>
    %cst_171 = arith.constant dense<0.000000e+00> : vector<8x288xf32>
    %149 = tpu.matmul %148, %146, %cst_171 {dimension_numbers = #tpu.dot_dimension_numbers<[1], [0], [0], [1], [0, 0, 1, 1], [], []>} : vector<8x8xf32>, vector<8x288xf32>, vector<8x288xf32> -> vector<8x288xf32>
    %150 = arith.addf %144, %149 : vector<8x288xf32>
    %c0_172 = arith.constant 0 : index
    %c0_173 = arith.constant 0 : index
    %c0_174 = arith.constant 0 : index
    %c37_175 = arith.constant 37 : index
    %151 = vector.load %arg6[%c0_172, %c0_173, %c0_174, %c37_175] : memref<1x1x8x342xf32, #tpu.memory_space<vmem>>, vector<1x1x8x288xf32>
    %152 = vector.shape_cast %151 : vector<1x1x8x288xf32> to vector<8x288xf32>
    %c25 = arith.constant 25 : index
    %c0_176 = arith.constant 0 : index
    %c0_177 = arith.constant 0 : index
    %153 = vector.load %arg2[%c25, %c0_176, %c0_177] : memref<27x8x8xf32, #tpu.memory_space<vmem>>, vector<1x8x8xf32>
    %154 = vector.shape_cast %153 : vector<1x8x8xf32> to vector<8x8xf32>
    %cst_178 = arith.constant dense<0.000000e+00> : vector<8x288xf32>
    %155 = tpu.matmul %154, %152, %cst_178 {dimension_numbers = #tpu.dot_dimension_numbers<[1], [0], [0], [1], [0, 0, 1, 1], [], []>} : vector<8x8xf32>, vector<8x288xf32>, vector<8x288xf32> -> vector<8x288xf32>
    %156 = arith.addf %150, %155 : vector<8x288xf32>
    %c0_179 = arith.constant 0 : index
    %c0_180 = arith.constant 0 : index
    %c0_181 = arith.constant 0 : index
    %c38_182 = arith.constant 38 : index
    %157 = vector.load %arg6[%c0_179, %c0_180, %c0_181, %c38_182] : memref<1x1x8x342xf32, #tpu.memory_space<vmem>>, vector<1x1x8x288xf32>
    %158 = vector.shape_cast %157 : vector<1x1x8x288xf32> to vector<8x288xf32>
    %c26 = arith.constant 26 : index
    %c0_183 = arith.constant 0 : index
    %c0_184 = arith.constant 0 : index
    %159 = vector.load %arg2[%c26, %c0_183, %c0_184] : memref<27x8x8xf32, #tpu.memory_space<vmem>>, vector<1x8x8xf32>
    %160 = vector.shape_cast %159 : vector<1x8x8xf32> to vector<8x8xf32>
    %cst_185 = arith.constant dense<0.000000e+00> : vector<8x288xf32>
    %161 = tpu.matmul %160, %158, %cst_185 {dimension_numbers = #tpu.dot_dimension_numbers<[1], [0], [0], [1], [0, 0, 1, 1], [], []>} : vector<8x8xf32>, vector<8x288xf32>, vector<8x288xf32> -> vector<8x288xf32>
    %162 = arith.addf %156, %161 : vector<8x288xf32>
    %c0_186 = arith.constant 0 : index
    %c0_187 = arith.constant 0 : index
    %163 = vector.load %arg3[%c0_186, %c0_187] : memref<8x1xf32, #tpu.memory_space<vmem>>, vector<8x1xf32>
    %164 = vector.broadcast %163 : vector<8x1xf32> to vector<8x288xf32>
    %165 = arith.addf %162, %164 : vector<8x288xf32>
    %cst_188 = arith.constant 0.000000e+00 : f32
    %166 = vector.broadcast %cst_188 : f32 to vector<8x288xf32>
    %167 = arith.maximumf %165, %166 : vector<8x288xf32>
    %c0_189 = arith.constant 0 : index
    %c0_190 = arith.constant 0 : index
    %c0_191 = arith.constant 0 : index
    %c0_192 = arith.constant 0 : index
    %168 = vector.load %arg7[%c0_189, %c0_190, %c0_191, %c0_192] : memref<1x1x8x288xf32, #tpu.memory_space<vmem>>, vector<1x1x8x288xf32>
    %169 = vector.shape_cast %168 : vector<1x1x8x288xf32> to vector<8x288xf32>
    %170 = vector.shape_cast %167 : vector<8x288xf32> to vector<1x1x8x288xf32>
    tpu.vector_store %arg7[%c0_189, %c0_190, %c0_191, %c0_192], %170 {strides = array<i32>} : memref<1x1x8x288xf32, #tpu.memory_space<vmem>>, vector<1x1x8x288xf32>,
    return
  }
  func.func @transform_0(%arg0: i32, %arg1: i32) -> (i32, i32, i32) {
    %c0_i32 = arith.constant 0 : i32
    %c0_i32_0 = arith.constant 0 : i32
    %c0_i32_1 = arith.constant 0 : i32
    %c0_i32_2 = arith.constant 0 : i32
    return %c0_i32, %c0_i32_0, %c0_i32_1 : i32, i32, i32
  }
  func.func @transform_1(%arg0: i32, %arg1: i32) -> (i32, i32) {
    %c0_i32 = arith.constant 0 : i32
    %c0_i32_0 = arith.constant 0 : i32
    %c0_i32_1 = arith.constant 0 : i32
    return %c0_i32, %c0_i32_0 : i32, i32
  }
  func.func @transform_2(%arg0: i32, %arg1: i32) -> (i32, i32, i32, i32) {
    %c0_i32 = arith.constant 0 : i32
    %0 = arith.addi %arg1, %c0_i32 : i32
    %c0_i32_0 = arith.constant 0 : i32
    %c0_i32_1 = arith.constant 0 : i32
    %c0_i32_2 = arith.constant 0 : i32
    return %arg0, %0, %c0_i32_0, %c0_i32_1 : i32, i32, i32, i32
  }
  func.func @transform_3(%arg0: i32, %arg1: i32) -> (i32, i32, i32, i32) {
    %c1_i32 = arith.constant 1 : i32
    %0 = arith.addi %arg1, %c1_i32 : i32
    %c0_i32 = arith.constant 0 : i32
    %c0_i32_0 = arith.constant 0 : i32
    %c0_i32_1 = arith.constant 0 : i32
    return %arg0, %0, %c0_i32, %c0_i32_0 : i32, i32, i32, i32
  }
  func.func @transform_4(%arg0: i32, %arg1: i32) -> (i32, i32, i32, i32) {
    %c2_i32 = arith.constant 2 : i32
    %0 = arith.addi %arg1, %c2_i32 : i32
    %c0_i32 = arith.constant 0 : i32
    %c0_i32_0 = arith.constant 0 : i32
    %c0_i32_1 = arith.constant 0 : i32
    return %arg0, %0, %c0_i32, %c0_i32_0 : i32, i32, i32, i32
  }
  func.func @transform_5(%arg0: i32, %arg1: i32) -> (i32, i32, i32, i32) {
    %c0_i32 = arith.constant 0 : i32
    %c0_i32_0 = arith.constant 0 : i32
    %c0_i32_1 = arith.constant 0 : i32
    return %arg0, %arg1, %c0_i32, %c0_i32_0 : i32, i32, i32, i32
  }
}

</mosaic_0001>

<bundles_post_ra>
// kernel: conv3d_upsample_block.2
= control target key start
LH: loop header
LB: loop body
LE: loop exit
PB: predicated region body
PF: predicated region fallthrough
CT: control target
= control target key end

     0   :  { %s1495_s18 = smov 0   ;;  %s1497_s19 = smov 0   ;;  %s1744_s0 = inlined_call_operand.vmem [shape: f32[27,8,4], index: 0, kind: input, shape index: {}]   ;;  %s1745_s1 = inlined_call_operand.vmem [shape: f32[8,1], index: 1, kind: input, shape index: {}]   ;;  %s1746_s2 = inlined_call_operand.vmem [shape: f32[2,10,4,110], index: 2, kind: input, shape index: {}, may-alias: {2,3,4}]   ;;  %s1747_s3 = inlined_call_operand.vmem [shape: f32[2,10,4,110], index: 3, kind: input, shape index: {}, may-alias: {2,3,4}]   ;;  %s1748_s4 = inlined_call_operand.vmem [shape: f32[2,10,4,110], index: 4, kind: input, shape index: {}, may-alias: {2,3,4}]   ;;  %s1749_s5 = inlined_call_operand.vmem [shape: f32[2,8,8,80], index: 5, kind: output, shape index: {}]  }
   0x1   :  { %s1499_s20 = smov 0   ;;  %s1501_s21 = smov 0  }
   0x2   :  { %s1503_s22 = smov 0  }
   0x3 LB: > { %s24_s23 = sadd.s32 1, %s1446_s20  ;;  %s27_s24 = sadd.s32 1, %s1450_s21  ;;  %s1454_s22 = sphi %s1503_s22, %s15_s22   ;;  %s1450_s21 = sphi %s1501_s21, %s1753_s21   ;;  %s1446_s20 = sphi %s1499_s20, %s1752_s20   ;;  %s1442_s19 = sphi %s1497_s19, %s1751_s19   ;;  %s1438_s18 = sphi %s1495_s18, %s1750_s18  }
   0x4   : > { %p25_p0 = scmp.ge.s32.totalorder %s24_s23, 8  ;;  %p1277_p1 = scmp.ge.s32.totalorder %s1454_s22, 1 }
   0x5   : > { %p244_p2 = scmp.lt.s32.totalorder %s1454_s22, 17 }
   0x6   : > { %s1755_s23 = smov (%p25_p0, %s24_s23), 0  ;;  %s1757_s24 = smov (!%p25_p0, %s27_s24), %s1450_s21 }
   0x7   : > { %p245_p3 = pnand %p1277_p1, %p244_p2  ;;  %p29_p4 = scmp.ge.s32.totalorder %s1757_s24, 2 }
   0x8   : > { %p296_p5 = scmp.lt.s32.totalorder (!%p245_p3), %s1442_s19, 1  ;;  %p298_p6 = scmp.lt.s32.totalorder (!%p245_p3), %s1438_s18, 9 }
   0x9   : > { %s1759_s24 = smov (%p29_p4, %s1757_s24), 0  ;;  %248 = sbr.rel (%p245_p3) target bundleno = 333 (0x14d), region = 40 }
   0xa   : > { %s304_s28 = sadd.s32 (!%p245_p3), 1, %s1438_s18  ;;  %s1456_s8 = smov (!%p245_p3), 126  }
   0xb   : > { %p307_p7 = scmp.lt.s32.totalorder (!%p245_p3), %s304_s28, 9  ;;  %s1457_s9 = smov (!%p245_p3), 118  }
   0xc   : > { %s1458_s10 = smov (!%p245_p3), 117   ;;  %s1459_s13 = smov (!%p245_p3), 127  }
   0xd   : > { %s1460_s14 = smov (!%p245_p3), 108   ;;  %s1461_s15 = smov (!%p245_p3), 107  }
   0xe   : > { %s1761_s19 = smov (!%p296_p5, %s1442_s19), 1  ;;  %s1763_s28 = smov (!%p307_p7, %s304_s28), 9  ;;  %vm343_vm0 = vcmask 1043456   ;;  %vm339_vm1 = vcmask 31744   ;;  %v333_v4 = vld [vmem:[%s1744_s0] sm:$0xff]  ;;  %v1288_v7 = vld [vmem:[%s1744_s0 + $0x10] sm:$0xff] }
   0xf   : > { %s299_s25 = scalar_select %p298_p6, %s1438_s18, 9  ;;  %v1291_v10 = vld [vmem:[%s1744_s0 + $0x18] sm:$0xff]  ;;  %v1300_v12 = vld [vmem:[%s1744_s0 + $0x30] sm:$0xff]  ;;  %v1283_v15 = vld [vmem:[%s1744_s0 + $0x8] sm:$0xff]  ;;  %v1464_v31 = vmov 0   ;;  %vm1149_vm2 = vcmask 654336  }
  0x10   : > { %s1532_s26 = smul.u32 10, %s1761_s19  ;;  %v1303_v16 = vld [vmem:[%s1744_s0 + $0x38] sm:$0xff]  ;;  %v1297_v18 = vld [vmem:[%s1744_s0 + $0x28] sm:$0xff]  ;;  %v1312_v19 = vld [vmem:[%s1744_s0 + $0x50] sm:$0xff]  ;;  %1415 = vset.pattern.permute.xlu0 %v1464_v31  ;;  %p326_p9 = scmp.lt.s32.totalorder %s1438_s18, 7 }
  0x11   : > { %v1294_v22 = vld [vmem:[%s1744_s0 + $0x20] sm:$0xff]  ;;  %v1315_v24 = vld [vmem:[%s1744_s0 + $0x58] sm:$0xff]  ;;  %v1309_v25 = vld [vmem:[%s1744_s0 + $0x48] sm:$0xff] }
  0x12   : > { %s301_s27 = sadd.s32 %s1532_s26, %s299_s25  ;;  %s310_s11 = sadd.s32 %s1532_s26, %s1763_s28  ;;  %v1306_v28 = vld [vmem:[%s1744_s0 + $0x40] sm:$0xff]  ;;  %v1324_v29 = vld [vmem:[%s1744_s0 + $0x70] sm:$0xff]  ;;  %v1327_v32 = vld [vmem:[%s1744_s0 + $0x78] sm:$0xff] }
  0x13   : > { %s1278_s29 = sshll.u32 %s301_s27, 2  ;;  %s1279_s12 = sshll.u32 %s310_s11, 2  ;;  %v1141_v30 = vld [vmem:[%s1745_s1] sm:$0xff]  ;;  %v1321_v33 = vld [vmem:[%s1744_s0 + $0x68] sm:$0xff]  ;;  %v1336_v38 = vld [vmem:[%s1744_s0 + $0x90] sm:$0xff] }
  0x14   : > { %s303_s7 = scalar_lea.vmem %s1746_s2, %s1278_s29  ;;  %s312_s25 = scalar_lea.vmem %s1747_s3, %s1279_s12  ;;  %v1318_v37 = vld [vmem:[%s1744_s0 + $0x60] sm:$0xff]  ;;  %v1339_v39 = vld [vmem:[%s1744_s0 + $0x98] sm:$0xff]  ;;  %v1333_v40 = vld [vmem:[%s1744_s0 + $0x88] sm:$0xff] }
  0x15   : > { %v332_v0 = vld [vmem:[%s303_s7] sm:$0xf]  ;;  %s1462_s27 = smov 116   ;;  %s314_s28 = sadd.s32 2, %s1438_s18  ;;  %v1348_v44 = vld [vmem:[%s1744_s0 + $0xb0] sm:$0xff]  ;;  %v1351_v46 = vld [vmem:[%s1744_s0 + $0xb8] sm:$0xff] }
  0x16   : > { %393 = vrot.lane.b32.xlu0 %v332_v0, %s1456_s8  ;;  %423 = vrot.lane.b32.xlu1 %v332_v0, %s1457_s9  ;;  %v1548_v1 = vld [vmem:[%s312_s25] sm:$0xf]  ;;  %s1463_s29 = smov 106   ;;  %p317_p8 = scmp.lt.s32.totalorder %s314_s28, 9  ;;  %v1345_v47 = vld [vmem:[%s1744_s0 + $0xa8] sm:$0xff] }
  0x17   : > { %453 = vrot.lane.b32.xlu2 %v332_v0, %s1458_s10  ;;  %1286 = vmatpush.msk.msra.mxu1 %vm343_vm0, %v332_v0  ;;  %v1330_v43 = vld [vmem:[%s1744_s0 + $0x80] sm:$0xff]  ;;  %v1360_v51 = vld [vmem:[%s1744_s0 + $0xd0] sm:$0xff]  ;;  %v1357_v52 = vld [vmem:[%s1744_s0 + $0xc8] sm:$0xff]  ;;  %s1767_s18 = smov (!%p326_p9, %s1438_s18), 7 }
  0x18   : > { %s1765_s28 = smov (!%p317_p8, %s314_s28), 9  ;;  %1287 = vmatmul.msk.f32.vlgmr.msra.gmra.mxu1 %vm339_vm1, %v333_v4  ;;  %v1342_v50 = vld [vmem:[%s1744_s0 + $0xa0] sm:$0xff] }
  0x19   : > { %s320_s30 = sadd.s32 %s1532_s26, %s1765_s28  ;;  %v1354_v55 = vld [vmem:[%s1744_s0 + $0xc0] sm:$0xff] }
  0x1a   : > { %s1280_s6 = sshll.u32 %s320_s30, 2 }
  0x1b   : > { %s322_s12 = scalar_lea.vmem %s1748_s4, %s1280_s6 }
  0x1c   : > { %v1567_v2 = vld [vmem:[%s322_s12] sm:$0xf] }
  0x1e   : > { %337 = vrot.lane.b32.xlu0 %v332_v0, %s1459_s13  ;;  %513 = vrot.lane.b32.xlu1 %v332_v0, %s1460_s14 }
  0x1f   : > { %543 = vrot.lane.b32.xlu2 %v332_v0, %s1461_s15 }
  0x26   : > { %483 = vrot.lane.b32.xlu0 %v332_v0, %s1462_s27  ;;  %633 = vrot.lane.b32.xlu1 %v1548_v1, %s1459_s13 }
  0x27   : > { %573 = vrot.lane.b32.xlu2 %v332_v0, %s1463_s29 }
  0x2e   : > { %663 = vrot.lane.b32.xlu0 %v1548_v1, %s1456_s8  ;;  %753 = vrot.lane.b32.xlu1 %v1548_v1, %s1462_s27 }
  0x2f   : > { %693 = vrot.lane.b32.xlu2 %v1548_v1, %s1457_s9 }
  0x36   : > { %783 = vrot.lane.b32.xlu0 %v1548_v1, %s1460_s14  ;;  %723 = vrot.lane.b32.xlu1 %v1548_v1, %s1458_s10 }
  0x37   : > { %813 = vrot.lane.b32.xlu2 %v1548_v1, %s1461_s15 }
  0x3e   : > { %903 = vrot.lane.b32.xlu0 %v1567_v2, %s1459_s13  ;;  %843 = vrot.lane.b32.xlu1 %v1548_v1, %s1463_s29 }
  0x3f   : > { %993 = vrot.lane.b32.xlu2 %v1567_v2, %s1458_s10 }
  0x46   : > { %933 = vrot.lane.b32.xlu0 %v1567_v2, %s1456_s8  ;;  %1023 = vrot.lane.b32.xlu1 %v1567_v2, %s1462_s27 }
  0x47   : > { %963 = vrot.lane.b32.xlu2 %v1567_v2, %s1457_s9  ;;  %s1281_s9 = sshll.u32 %s1761_s19, 3 }
  0x48   : > { %s329_s10 = sadd.s32 %s1281_s9, %s1767_s18 }
  0x49   : > { %s1282_s13 = sshll.u32 %s329_s10, 3 }
  0x4a   : > { %s331_s16 = scalar_lea.vmem %s1749_s5, %s1282_s13 }
  0x4e   : > { %1113 = vrot.lane.b32.xlu0 %v1567_v2, %s1463_s29  ;;  %1053 = vrot.lane.b32.xlu1 %v1567_v2, %s1460_s14 }
  0x4f   : > { %1083 = vrot.lane.b32.xlu2 %v1567_v2, %s1461_s15 }
  0x56   : > { %1144 = vperm.xlu0 %1415, %v1141_v30  }
  0x71   : > { %v454_v3 = vpop.permute.xlu2 %453 }
  0x79   : > { %v544_v5 = vpop.permute.xlu2 %543 }
  0x81   : > { %v574_v6 = vpop.permute.xlu2 %573 }
  0x88   : > { %v394_v8 = vpop.permute.xlu0 %393  ;;  %v424_v9 = vpop.permute.xlu1 %423 }
  0x89   : > { %1289 = vmatpush.msk.msra.mxu2 %vm343_vm0, %v394_v8  ;;  %1292 = vmatpush.msk.msra.mxu3 %vm343_vm0, %v424_v9  ;;  %v694_v11 = vpop.permute.xlu2 %693 }
  0x8a   : > { %1290 = vmatmul.msk.f32.vlgmr.msra.gmra.mxu2 %vm339_vm1, %v1288_v7  ;;  %1293 = vmatmul.msk.f32.vlgmr.msra.gmra.mxu3 %vm339_vm1, %v1291_v10 }
  0x8b   : > { %1304 = vmatpush.msk.msrb.mxu3 %vm343_vm0, %v544_v5 }
  0x90   : > { %v338_v13 = vpop.permute.xlu0 %337  ;;  %v514_v14 = vpop.permute.xlu1 %513 }
  0x91   : > { %1284 = vmatpush.msk.msra.mxu0 %vm343_vm0, %v338_v13  ;;  %1301 = vmatpush.msk.msrb.mxu2 %vm343_vm0, %v514_v14  ;;  %v814_v17 = vpop.permute.xlu2 %813 }
  0x92   : > { %1302 = vmatmul.msk.f32.vlgmr.msrb.gmra.mxu2 %vm339_vm1, %v1300_v12  ;;  %1285 = vmatmul.msk.f32.vlgmr.msra.gmra.mxu0 %vm339_vm1, %v1283_v15 }
  0x93   : > { %1295 = vmatpush.msk.msrb.mxu0 %vm343_vm0, %v454_v3  ;;  %1305 = vmatmul.msk.f32.vlgmr.msrb.gmra.mxu3 %vm339_vm1, %v1303_v16 }
  0x95   : > { %1307 = vmatpush.msk.msra.mxu0 %vm343_vm0, %v574_v6  ;;  %v388_v56 = vpop.f32.mrf.mxu1 }
  0x98   : > { %v484_v20 = vpop.permute.xlu0 %483  ;;  %v634_v21 = vpop.permute.xlu1 %633 }
  0x99   : > { %1298 = vmatpush.msk.msrb.mxu1 %vm343_vm0, %v484_v20  ;;  %1313 = vmatpush.msk.msra.mxu2 %vm343_vm0, %v634_v21  ;;  %v994_v23 = vpop.permute.xlu2 %993 }
  0x9a   : > { %1299 = vmatmul.msk.f32.vlgmr.msrb.gmra.mxu1 %vm339_vm1, %v1297_v18  ;;  %1314 = vmatmul.msk.f32.vlgmr.msra.gmra.mxu2 %vm339_vm1, %v1312_v19 }
  0x9b   : > { %1296 = vmatmul.msk.f32.vlgmr.msrb.gmra.mxu0 %vm339_vm1, %v1294_v22  ;;  %1310 = vmatpush.msk.msra.mxu1 %vm343_vm0, %v1548_v1 }
  0x9c   : > { %1319 = vmatpush.msk.msrb.mxu0 %vm343_vm0, %v694_v11 }
  0xa0   : > { %v664_v26 = vpop.permute.xlu0 %663  ;;  %v754_v27 = vpop.permute.xlu1 %753 }
  0xa1   : > { %1316 = vmatpush.msk.msra.mxu3 %vm343_vm0, %v664_v26  ;;  %1325 = vmatpush.msk.msrb.mxu2 %vm343_vm0, %v754_v27  ;;  %v964_v34 = vpop.permute.xlu2 %963 }
  0xa2   : > { %1317 = vmatmul.msk.f32.vlgmr.msra.gmra.mxu3 %vm339_vm1, %v1315_v24  ;;  %1311 = vmatmul.msk.f32.vlgmr.msra.gmra.mxu1 %vm339_vm1, %v1309_v25 }
  0xa3   : > { %1308 = vmatmul.msk.f32.vlgmr.msra.gmra.mxu0 %vm339_vm1, %v1306_v28  ;;  %1326 = vmatmul.msk.f32.vlgmr.msrb.gmra.mxu2 %vm339_vm1, %v1324_v29 }
  0xa4   : > { %1331 = vmatpush.msk.msra.mxu0 %vm343_vm0, %v814_v17  ;;  %1337 = vmatpush.msk.msra.mxu2 %vm343_vm0, %v1567_v2 }
  0xa6   : > { %1349 = vmatpush.msk.msrb.mxu2 %vm343_vm0, %v994_v23 }
  0xa8   : > { %v784_v35 = vpop.permute.xlu0 %783  ;;  %v724_v36 = vpop.permute.xlu1 %723 }
  0xa9   : > { %1328 = vmatpush.msk.msrb.mxu3 %vm343_vm0, %v784_v35  ;;  %1322 = vmatpush.msk.msrb.mxu1 %vm343_vm0, %v724_v36  ;;  %v1084_v45 = vpop.permute.xlu2 %1083 }
  0xaa   : > { %1329 = vmatmul.msk.f32.vlgmr.msrb.gmra.mxu3 %vm339_vm1, %v1327_v32  ;;  %1323 = vmatmul.msk.f32.vlgmr.msrb.gmra.mxu1 %vm339_vm1, %v1321_v33 }
  0xab   : > { %1320 = vmatmul.msk.f32.vlgmr.msrb.gmra.mxu0 %vm339_vm1, %v1318_v37  ;;  %1338 = vmatmul.msk.f32.vlgmr.msra.gmra.mxu2 %vm339_vm1, %v1336_v38 }
  0xb0   : > { %v904_v41 = vpop.permute.xlu0 %903  ;;  %v844_v42 = vpop.permute.xlu1 %843 }
  0xb1   : > { %1340 = vmatpush.msk.msra.mxu3 %vm343_vm0, %v904_v41  ;;  %1334 = vmatpush.msk.msra.mxu1 %vm343_vm0, %v844_v42 }
  0xb2   : > { %1341 = vmatmul.msk.f32.vlgmr.msra.gmra.mxu3 %vm339_vm1, %v1339_v39  ;;  %1335 = vmatmul.msk.f32.vlgmr.msra.gmra.mxu1 %vm339_vm1, %v1333_v40 }
  0xb3   : > { %1332 = vmatmul.msk.f32.vlgmr.msra.gmra.mxu0 %vm339_vm1, %v1330_v43  ;;  %1346 = vmatpush.msk.msrb.mxu1 %vm343_vm0, %v964_v34 }
  0xb4   : > { %1350 = vmatmul.msk.f32.vlgmr.msrb.gmra.mxu2 %vm339_vm1, %v1348_v44 }
  0xb5   : > { %1358 = vmatpush.msk.msra.mxu1 %vm343_vm0, %v1084_v45 }
  0xb8   : > { %v934_v48 = vpop.permute.xlu0 %933  ;;  %v1024_v49 = vpop.permute.xlu1 %1023 }
  0xb9   : > { %1343 = vmatpush.msk.msrb.mxu0 %vm343_vm0, %v934_v48  ;;  %1352 = vmatpush.msk.msrb.mxu3 %vm343_vm0, %v1024_v49 }
  0xba   : > { %1353 = vmatmul.msk.f32.vlgmr.msrb.gmra.mxu3 %vm339_vm1, %v1351_v46  ;;  %1347 = vmatmul.msk.f32.vlgmr.msrb.gmra.mxu1 %vm339_vm1, %v1345_v47 }
  0xbb   : > { %1344 = vmatmul.msk.f32.vlgmr.msrb.gmra.mxu0 %vm339_vm1, %v1342_v50 }
  0xc0   : > { %v1114_v53 = vpop.permute.xlu0 %1113  ;;  %v1054_v54 = vpop.permute.xlu1 %1053 }
  0xc1   : > { %1361 = vmatpush.msk.msra.mxu2 %vm343_vm0, %v1114_v53  ;;  %1355 = vmatpush.msk.msra.mxu0 %vm343_vm0, %v1054_v54 }
  0xc2   : > { %1362 = vmatmul.msk.f32.vlgmr.msra.gmra.mxu2 %vm339_vm1, %v1360_v51  ;;  %1359 = vmatmul.msk.f32.vlgmr.msra.gmra.mxu1 %vm339_vm1, %v1357_v52 }
  0xc3   : > { %1356 = vmatmul.msk.f32.vlgmr.msra.gmra.mxu0 %vm339_vm1, %v1354_v55 }
  0xc8   : > { %v1145_v44 = vpop.permute.xlu0 %1144 }
 0x10d   : > { %v417_v57 = vpop.f32.mrf.mxu2  ;;  %v447_v60 = vpop.f32.mrf.mxu3 }
 0x10f   : > { %v363_v58 = vpop.f32.mrf.mxu0 }
 0x110   : > { %v389_v59 = vadd.f32 %v388_v56, %v363_v58 }
 0x112   : > { %v420_v61 = vadd.f32 %v417_v57, %v389_v59 }
 0x114   : > { %v450_v62 = vadd.f32 %v447_v60, %v420_v61 }
 0x115   : > { %v537_v63 = vpop.f32.mrf.mxu2 }
 0x116   : > { %v567_v4 = vpop.f32.mrf.mxu3 }
 0x117   : > { %v507_v0 = vpop.f32.mrf.mxu1 }
 0x118   : > { %v477_v1 = vpop.f32.mrf.mxu0 }
 0x119   : > { %v480_v2 = vadd.f32 %v477_v1, %v450_v62 }
 0x11b   : > { %v510_v3 = vadd.f32 %v507_v0, %v480_v2 }
 0x11d   : > { %v540_v5 = vadd.f32 %v537_v63, %v510_v3  ;;  %v657_v6 = vpop.f32.mrf.mxu2 }
 0x11f   : > { %v570_v7 = vadd.f32 %v567_v4, %v540_v5  ;;  %v627_v8 = vpop.f32.mrf.mxu1 }
 0x120   : > { %v597_v9 = vpop.f32.mrf.mxu0 }
 0x121   : > { %v600_v10 = vadd.f32 %v597_v9, %v570_v7 }
 0x123   : > { %v630_v11 = vadd.f32 %v627_v8, %v600_v10 }
 0x125   : > { %v660_v12 = vadd.f32 %v657_v6, %v630_v11  ;;  %v687_v13 = vpop.f32.mrf.mxu3 }
 0x126   : > { %v777_v14 = vpop.f32.mrf.mxu2 }
 0x127   : > { %v690_v15 = vadd.f32 %v687_v13, %v660_v12  ;;  %v747_v16 = vpop.f32.mrf.mxu1 }
 0x128   : > { %v717_v17 = vpop.f32.mrf.mxu0 }
 0x129   : > { %v720_v18 = vadd.f32 %v717_v17, %v690_v15 }
 0x12b   : > { %v750_v19 = vadd.f32 %v747_v16, %v720_v18 }
 0x12d   : > { %v780_v20 = vadd.f32 %v777_v14, %v750_v19  ;;  %v807_v21 = vpop.f32.mrf.mxu3 }
 0x12e   : > { %v897_v25 = vpop.f32.mrf.mxu2 }
 0x12f   : > { %v810_v22 = vadd.f32 %v807_v21, %v780_v20  ;;  %v867_v23 = vpop.f32.mrf.mxu1 }
 0x130   : > { %v837_v24 = vpop.f32.mrf.mxu0 }
 0x131   : > { %v840_v26 = vadd.f32 %v837_v24, %v810_v22 }
 0x133   : > { %v870_v27 = vadd.f32 %v867_v23, %v840_v26 }
 0x135   : > { %v900_v28 = vadd.f32 %v897_v25, %v870_v27  ;;  %v927_v29 = vpop.f32.mrf.mxu3 }
 0x137   : > { %v930_v30 = vadd.f32 %v927_v29, %v900_v28  ;;  %v987_v31 = vpop.f32.mrf.mxu1  ;;  %v1017_v34 = vpop.f32.mrf.mxu2 }
 0x138   : > { %v957_v32 = vpop.f32.mrf.mxu0 }
 0x139   : > { %v960_v33 = vadd.f32 %v957_v32, %v930_v30 }
 0x13b   : > { %v990_v35 = vadd.f32 %v987_v31, %v960_v33 }
 0x13d   : > { %v1020_v36 = vadd.f32 %v1017_v34, %v990_v35  ;;  %v1047_v37 = vpop.f32.mrf.mxu3 }
 0x13f   : > { %v1050_v38 = vadd.f32 %v1047_v37, %v1020_v36  ;;  %v1107_v41 = vpop.f32.mrf.mxu1 }
 0x140   : > { %v1077_v39 = vpop.f32.mrf.mxu0 }
 0x141   : > { %v1080_v40 = vadd.f32 %v1077_v39, %v1050_v38 }
 0x143   : > { %v1110_v42 = vadd.f32 %v1107_v41, %v1080_v40 }
 0x145   : > { %v1137_v43 = vpop.f32.mrf.mxu2 }
 0x146   : > { %v1140_v45 = vadd.f32 %v1137_v43, %v1110_v42 }
 0x148   : > { %v1147_v46 = vadd.f32 %v1145_v44, %v1140_v45 }
 0x14a   : > { %v1148_v47 = vmax.f32 %v1147_v46, 0.0 }
 0x14c   : > { %1150 = vst.msk [vmem:[%s331_s16] sm:$0xff] %vm1149_vm2, %v1148_v47 }
 0x14d PF: > { %s15_s22 = sadd.s32 1, %s1454_s22   ;;  %s1750_s18 = smov %s1446_s20 }
 0x14e   : > { %p12_p10 = scmp.ge.s32.totalorder %s15_s22, 18   ;;  %s1751_s19 = smov %s1450_s21 }
 0x14f   : > { %s1752_s20 = smov %s1755_s23  ;;  %s1753_s21 = smov %s1759_s24 }
 0x150   :  { %14 = sbr.rel (!%p12_p10) target bundleno = 3 (0x3), region = 102 }

// kernel: conv3d_upsample_block.3
= control target key start
LH: loop header
LB: loop body
LE: loop exit
PB: predicated region body
PF: predicated region fallthrough
CT: control target
= control target key end

     0   :  { %s2989_s18 = smov 0   ;;  %s2991_s19 = smov 0   ;;  %s3386_s0 = inlined_call_operand.vmem [shape: f32[27,8,8], index: 0, kind: input, shape index: {}]   ;;  %s3387_s1 = inlined_call_operand.vmem [shape: f32[8,1], index: 1, kind: input, shape index: {}]   ;;  %s3388_s2 = inlined_call_operand.vmem [shape: f32[2,18,8,342], index: 2, kind: input, shape index: {}, may-alias: {2,3,4}]   ;;  %s3389_s3 = inlined_call_operand.vmem [shape: f32[2,18,8,342], index: 3, kind: input, shape index: {}, may-alias: {2,3,4}]   ;;  %s3390_s4 = inlined_call_operand.vmem [shape: f32[2,18,8,342], index: 4, kind: input, shape index: {}, may-alias: {2,3,4}]   ;;  %s3391_s5 = inlined_call_operand.vmem [shape: f32[2,16,8,288], index: 5, kind: output, shape index: {}]  }
   0x1   :  { %s2993_s20 = smov 0   ;;  %s2995_s21 = smov 0  }
   0x2   :  { %s2997_s22 = smov 0  }
   0x3 LB: > { %s24_s23 = sadd.s32 1, %s2940_s20  ;;  %s27_s24 = sadd.s32 1, %s2944_s21  ;;  %s2948_s22 = sphi %s2997_s22, %s15_s22   ;;  %s2944_s21 = sphi %s2995_s21, %s3395_s21   ;;  %s2940_s20 = sphi %s2993_s20, %s3394_s20   ;;  %s2936_s19 = sphi %s2991_s19, %s3393_s19   ;;  %s2932_s18 = sphi %s2989_s18, %s3392_s18  }
   0x4   : > { %p25_p0 = scmp.ge.s32.totalorder %s24_s23, 16  ;;  %p2620_p1 = scmp.ge.s32.totalorder %s2948_s22, 1 }
   0x5   : > { %p247_p2 = scmp.lt.s32.totalorder %s2948_s22, 33 }
   0x6   : > { %s3397_s23 = smov (%p25_p0, %s24_s23), 0  ;;  %s3399_s24 = smov (!%p25_p0, %s27_s24), %s2944_s21 }
   0x7   : > { %p248_p3 = pnand %p2620_p1, %p247_p2  ;;  %p29_p4 = scmp.ge.s32.totalorder %s3399_s24, 2 }
   0x8   : > { %p303_p5 = scmp.lt.s32.totalorder (!%p248_p3), %s2936_s19, 1  ;;  %p305_p6 = scmp.lt.s32.totalorder (!%p248_p3), %s2932_s18, 17 }
   0x9   : > { %s3401_s24 = smov (%p29_p4, %s3399_s24), 0  ;;  %251 = sbr.rel (%p248_p3) target bundleno = 440 (0x1b8), region = 40 }
   0xa   : > { %s2950_s8 = smov (!%p248_p3), 126   ;;  %s2951_s9 = smov (!%p248_p3), 127  }
   0xb   : > { %s2952_s10 = smov (!%p248_p3), 110   ;;  %s312_s11 = sadd.s32 (!%p248_p3), 1, %s2932_s18 }
   0xc   : > { %p315_p7 = scmp.lt.s32.totalorder (!%p248_p3), %s312_s11, 17  ;;  %s2953_s12 = smov (!%p248_p3), 109  }
   0xd   : > { %s2954_s13 = smov (!%p248_p3), 108   ;;  %s2955_s15 = smov (!%p248_p3), 92  }
   0xe   : > { %s3403_s19 = smov (!%p303_p5, %s2936_s19), 1  ;;  %s3405_s11 = smov (!%p315_p7, %s312_s11), 17  ;;  %v3111_v12 = vld [vmem:[%s3386_s0] sm:$0xff]  ;;  %vm364_vm0 = vcmask 64512   ;;  %vm358_vm1 = vcmask 1039360   ;;  %v2625_v22 = vld [vmem:[%s3386_s0 + $0x8] sm:$0xff] }
   0xf   : > { %s306_s25 = scalar_select %p305_p6, %s2932_s18, 17  ;;  %vm499_vm2 = vcmask 1031168   ;;  %vm579_vm3 = vcmask 900096   ;;  %v2632_v33 = vld [vmem:[%s3386_s0 + $0x10] sm:$0xff]  ;;  %vm659_vm4 = vcmask 891904   ;;  %vm739_vm5 = vcmask 883712  }
  0x10   : > { %s3026_s26 = smul.u32 54, %s3403_s19  ;;  %s2957_s30 = smov 90   ;;  %v2636_v41 = vld [vmem:[%s3386_s0 + $0x18] sm:$0xff]  ;;  %vm819_vm6 = vcmask 752640   ;;  %v2644_v51 = vld [vmem:[%s3386_s0 + $0x28] sm:$0xff]  ;;  %v2640_v57 = vld [vmem:[%s3386_s0 + $0x20] sm:$0xff] }
  0x11   : > { %s2734_s27 = smul.u32 3, %s306_s25  ;;  %s323_s6 = sadd.s32 2, %s2932_s18  ;;  %vm899_vm7 = vcmask 744448   ;;  %v2648_v60 = vld [vmem:[%s3386_s0 + $0x30] sm:$0xff]  ;;  %vm979_vm8 = vcmask 736256   ;;  %vm2477_vm9 = vcmask 261120  }
  0x12   : > { %s2736_s14 = smul.u32 3, %s3405_s11  ;;  %p326_p8 = scmp.lt.s32.totalorder %s323_s6, 17 }
  0x13   : > { %s309_s28 = sadd.s32 %s3026_s26, %s2734_s27  ;;  %p336_p9 = scmp.lt.s32.totalorder %s2932_s18, 15 }
  0x14   : > { %s2621_s29 = sshll.u32 %s309_s28, 3  ;;  %s319_s16 = sadd.s32 %s2736_s14, %s3026_s26 }
  0x15   : > { %s311_s7 = scalar_lea.vmem %s3388_s2, %s2621_s29  ;;  %s2622_s17 = sshll.u32 %s319_s16, 3 }
  0x16   : > { %v343_v0 = vld [vmem:[%s311_s7] sm:$0xff]  ;;  %v3032_v1 = vld [vmem:[%s311_s7 + $0x8] sm:$0xff]  ;;  %v3035_v3 = vld [vmem:[%s311_s7 + $0x10] sm:$0xff]  ;;  %s321_s28 = scalar_lea.vmem %s3389_s3, %s2622_s17  ;;  %s2956_s29 = smov 91  }
  0x17   : > { %v2794_v2 = vpack.i.bf16 %v3032_v1, %v343_v0  ;;  %446 = vmatpush.msra.mxu3 %v343_v0  ;;  %v2799_v4 = vpack.i.bf16 %v3035_v3, %v3032_v1  ;;  %v3063_v5 = vld [vmem:[%s321_s28] sm:$0xff]  ;;  %v3065_v6 = vld [vmem:[%s321_s28 + $0x8] sm:$0xff]  ;;  %v3073_v8 = vld [vmem:[%s321_s28 + $0x10] sm:$0xff]  ;;  %s3407_s6 = smov (!%p326_p8, %s323_s6), 17  ;;  %s3409_s18 = smov (!%p336_p9, %s2932_s18), 15 }
  0x18   : > { %v2829_v7 = vpack.i.bf16 %v3065_v6, %v3063_v5  ;;  %v2834_v9 = vpack.i.bf16 %v3073_v8, %v3065_v6  ;;  %s2737_s7 = smul.u32 3, %s3407_s6  ;;  %2629 = vmatmul.msk.f32.vlgmr.msra.gmra.mxu3 %vm364_vm0, %v3111_v12 }
  0x19   : > { %2795 = vrot.lane.b32.xlu1 %v2794_v2, %s2950_s8  ;;  %2790 = vrot.lane.b32.xlu0 %v2794_v2, %s2951_s9 }
  0x1a   : > { %2800 = vrot.lane.b32.xlu2 %v2799_v4, %s2952_s10  ;;  %s330_s11 = sadd.s32 %s2737_s7, %s3026_s26  ;;  %s2739_s26 = smul.u32 48, %s3403_s19 }
  0x1b   : > { %s2623_s14 = sshll.u32 %s330_s11, 3 }
  0x1c   : > { %s332_s25 = scalar_lea.vmem %s3390_s4, %s2623_s14 }
  0x1d   : > { %v3104_v10 = vld [vmem:[%s332_s25 + $0x8] sm:$0xff]  ;;  %v3106_v11 = vld [vmem:[%s332_s25] sm:$0xff]  ;;  %v3121_v14 = vld [vmem:[%s332_s25 + $0x10] sm:$0xff] }
  0x1e   : > { %v2874_v13 = vpack.i.bf16 %v3104_v10, %v3106_v11  ;;  %v2869_v15 = vpack.i.bf16 %v3121_v14, %v3104_v10 }
  0x21   : > { %497 = vrot.lane.b32.xlu1 %v3035_v3, %s2950_s8  ;;  %356 = vrot.lane.b32.xlu0 %v3035_v3, %s2951_s9 }
  0x22   : > { %573 = vrot.lane.b32.xlu2 %v343_v0, %s2952_s10 }
  0x29   : > { %2805 = vrot.lane.b32.xlu0 %v2794_v2, %s2953_s12  ;;  %2810 = vrot.lane.b32.xlu1 %v2794_v2, %s2954_s13 }
  0x2a   : > { %657 = vrot.lane.b32.xlu2 %v3035_v3, %s2953_s12 }
  0x31   : > { %737 = vrot.lane.b32.xlu0 %v3035_v3, %s2954_s13  ;;  %2815 = vrot.lane.b32.xlu1 %v2794_v2, %s2955_s15 }
  0x32   : > { %817 = vrot.lane.b32.xlu2 %v3035_v3, %s2955_s15 }
  0x39   : > { %2820 = vrot.lane.b32.xlu0 %v2799_v4, %s2956_s29  ;;  %893 = vrot.lane.b32.xlu1 %v343_v0, %s2956_s29 }
  0x3a   : > { %2825 = vrot.lane.b32.xlu2 %v2794_v2, %s2957_s30 }
  0x41   : > { %977 = vrot.lane.b32.xlu0 %v3035_v3, %s2957_s30  ;;  %2830 = vrot.lane.b32.xlu1 %v2829_v7, %s2951_s9 }
  0x42   : > { %1131 = vrot.lane.b32.xlu2 %v3073_v8, %s2951_s9 }
  0x49   : > { %1206 = vrot.lane.b32.xlu1 %v3063_v5, %s2950_s8  ;;  %2835 = vrot.lane.b32.xlu0 %v2834_v9, %s2950_s8 }
  0x4a   : > { %2840 = vrot.lane.b32.xlu2 %v2829_v7, %s2952_s10 }
  0x51   : > { %1289 = vrot.lane.b32.xlu1 %v3073_v8, %s2952_s10  ;;  %2845 = vrot.lane.b32.xlu0 %v2829_v7, %s2953_s12 }
  0x52   : > { %1368 = vrot.lane.b32.xlu2 %v3073_v8, %s2953_s12 }
  0x59   : > { %2850 = vrot.lane.b32.xlu0 %v2829_v7, %s2954_s13  ;;  %1447 = vrot.lane.b32.xlu1 %v3073_v8, %s2954_s13 }
  0x5a   : > { %2855 = vrot.lane.b32.xlu2 %v2834_v9, %s2955_s15 }
  0x61   : > { %1522 = vrot.lane.b32.xlu0 %v3063_v5, %s2955_s15  ;;  %2860 = vrot.lane.b32.xlu1 %v2829_v7, %s2956_s29 }
  0x62   : > { %2865 = vrot.lane.b32.xlu2 %v2829_v7, %s2957_s30 }
  0x69   : > { %1605 = vrot.lane.b32.xlu0 %v3073_v8, %s2956_s29  ;;  %1684 = vrot.lane.b32.xlu1 %v3073_v8, %s2957_s30 }
  0x6a   : > { %2870 = vrot.lane.b32.xlu2 %v2869_v15, %s2951_s9 }
  0x71   : > { %1833 = vrot.lane.b32.xlu0 %v3106_v11, %s2951_s9  ;;  %2875 = vrot.lane.b32.xlu1 %v2874_v13, %s2950_s8 }
  0x72   : > { %2880 = vrot.lane.b32.xlu2 %v2874_v13, %s2952_s10 }
  0x74   : > { %v2801_v16 = vpop.permute.xlu2 %2800 }
  0x75   : > { %v2803_v26 = vunpack.i.h.bf16 %v2801_v16  ;;  %v2802_v27 = vunpack.i.l.bf16 %v2801_v16 }
  0x77   : > { %v581_v36 = vsel %vm579_vm3, %v2802_v27, %v2803_v26 }
  0x79   : > { %1916 = vrot.lane.b32.xlu0 %v3121_v14, %s2950_s8  ;;  %1995 = vrot.lane.b32.xlu1 %v3121_v14, %s2952_s10  ;;  %s2738_s8 = smul.u32 3, %s3409_s18 }
  0x7a   : > { %2885 = vrot.lane.b32.xlu2 %v2874_v13, %s2953_s12 }
  0x7b   : > { %s340_s9 = sadd.s32 %s2739_s26, %s2738_s8 }
  0x7c   : > { %v574_v17 = vpop.permute.xlu2 %573  ;;  %s2624_s10 = sshll.u32 %s340_s9, 3 }
  0x7d   : > { %v580_v35 = vsel %vm579_vm3, %v574_v17, %v2802_v27 }
  0x81   : > { %2074 = vrot.lane.b32.xlu0 %v3121_v14, %s2953_s12  ;;  %2890 = vrot.lane.b32.xlu1 %v2869_v15, %s2954_s13  ;;  %s342_s12 = scalar_lea.vmem %s3391_s5, %s2624_s10 }
  0x82   : > { %2149 = vrot.lane.b32.xlu2 %v3106_v11, %s2954_s13 }
  0x84   : > { %v658_v34 = vpop.permute.xlu2 %657 }
  0x89   : > { %2895 = vrot.lane.b32.xlu0 %v2874_v13, %s2955_s15  ;;  %2900 = vrot.lane.b32.xlu1 %v2874_v13, %s2956_s29 }
  0x8a   : > { %2232 = vrot.lane.b32.xlu2 %v3121_v14, %s2955_s15 }
  0x8b   : > { %v2796_v18 = vpop.permute.xlu1 %2795  ;;  %v2791_v19 = vpop.permute.xlu0 %2790 }
  0x8c   : > { %v2793_v20 = vunpack.i.h.bf16 %v2791_v19  ;;  %v2792_v21 = vunpack.i.l.bf16 %v2791_v19  ;;  %v2798_v24 = vunpack.i.h.bf16 %v2796_v18  ;;  %v2797_v25 = vunpack.i.l.bf16 %v2796_v18  ;;  %v818_v47 = vpop.permute.xlu2 %817 }
  0x8e   : > { %v359_v23 = vsel %vm358_vm1, %v2792_v21, %v2793_v20  ;;  %v500_v30 = vsel %vm499_vm2, %v2797_v25, %v2798_v24  ;;  %v2660_v21 = vld [vmem:[%s3386_s0 + $0x48] sm:$0xff] }
  0x8f   : > { %383 = vmatpush.msra.mxu0 %v359_v23 }
  0x90   : > { %2626 = vmatmul.msk.f32.vlgmr.msra.gmra.mxu0 %vm364_vm0, %v2625_v22 }
  0x91   : > { %466 = vmatpush.msrb.mxu0 %v3032_v1  ;;  %2311 = vrot.lane.b32.xlu0 %v3121_v14, %s2956_s29 }
  0x92   : > { %2905 = vrot.lane.b32.xlu1 %v2874_v13, %s2957_s30  ;;  %2390 = vrot.lane.b32.xlu2 %v3121_v14, %s2957_s30 }
  0x93   : > { %v498_v28 = vpop.permute.xlu1 %497  ;;  %v357_v29 = vpop.permute.xlu0 %356 }
  0x94   : > { %423 = vmatpush.msra.mxu2 %v357_v29  ;;  %563 = vmatpush.msra.mxu0 %v498_v28  ;;  %v360_v31 = vsel %vm358_vm1, %v2793_v20, %v357_v29  ;;  %v501_v32 = vsel %vm499_vm2, %v2798_v24, %v498_v28  ;;  %v2826_v56 = vpop.permute.xlu2 %2825  ;;  %v2664_v28 = vld [vmem:[%s3386_s0 + $0x50] sm:$0xff] }
  0x95   : > { %403 = vmatpush.msra.mxu1 %v360_v31  ;;  %2628 = vmatmul.msk.f32.vlgmr.msra.gmra.mxu2 %vm364_vm0, %v2625_v22  ;;  %v2828_v63 = vunpack.i.h.bf16 %v2826_v56  ;;  %v2827_v0 = vunpack.i.l.bf16 %v2826_v56 }
  0x96   : > { %523 = vmatpush.msrb.mxu2 %v500_v30  ;;  %543 = vmatpush.msrb.mxu3 %v501_v32 }
  0x97   : > { %2627 = vmatmul.msk.f32.vlgmr.msra.gmra.mxu1 %vm364_vm0, %v2625_v22  ;;  %2634 = vmatmul.msk.f32.vlgmr.msrb.gmra.mxu3 %vm364_vm0, %v2632_v33 }
  0x98   : > { %486 = vmatpush.msrb.mxu1 %v3035_v3  ;;  %643 = vmatpush.msra.mxu3 %v2803_v26  ;;  %v980_v3 = vsel %vm979_vm8, %v2827_v0, %v2828_v63  ;;  %v2684_v0 = vld [vmem:[%s3386_s0 + $0x78] sm:$0xff] }
  0x99   : > { %623 = vmatpush.msra.mxu2 %v581_v36  ;;  %2630 = vmatmul.msk.f32.vlgmr.msrb.gmra.mxu0 %vm364_vm0, %v3111_v12 }
  0x9a   : > { %603 = vmatpush.msra.mxu1 %v580_v35 }
  0x9b   : > { %v2806_v37 = vpop.permute.xlu0 %2805  ;;  %v2811_v38 = vpop.permute.xlu1 %2810 }
  0x9c   : > { %v2808_v39 = vunpack.i.h.bf16 %v2806_v37  ;;  %v2807_v40 = vunpack.i.l.bf16 %v2806_v37  ;;  %v2813_v42 = vunpack.i.h.bf16 %v2811_v38  ;;  %v2812_v43 = vunpack.i.l.bf16 %v2811_v38  ;;  %v1132_v4 = vpop.permute.xlu2 %1131  ;;  %v2668_v37 = vld [vmem:[%s3386_s0 + $0x58] sm:$0xff] }
  0x9d   : > { %2633 = vmatmul.msk.f32.vlgmr.msrb.gmra.mxu2 %vm364_vm0, %v2632_v33 }
  0x9e   : > { %v661_v44 = vsel %vm659_vm4, %v2808_v39, %v658_v34  ;;  %v660_v45 = vsel %vm659_vm4, %v2807_v40, %v2808_v39  ;;  %723 = vmatpush.msrb.mxu2 %v658_v34  ;;  %v740_v46 = vsel %vm739_vm5, %v2812_v43, %v2813_v42 }
  0x9f   : > { %2631 = vmatmul.msk.f32.vlgmr.msrb.gmra.mxu1 %vm364_vm0, %v3111_v12  ;;  %2639 = vmatmul.msk.f32.vlgmr.msra.gmra.mxu3 %vm364_vm0, %v2636_v41  ;;  %v2652_v12 = vld [vmem:[%s3386_s0 + $0x38] sm:$0xff] }
  0xa0   : > { %683 = vmatpush.msrb.mxu0 %v660_v45  ;;  %703 = vmatpush.msrb.mxu1 %v661_v44  ;;  %v2676_v45 = vld [vmem:[%s3386_s0 + $0x68] sm:$0xff] }
  0xa1   : > { %763 = vmatpush.msrb.mxu3 %v740_v46  ;;  %2635 = vmatmul.msk.f32.vlgmr.msra.gmra.mxu0 %vm364_vm0, %v2632_v33 }
  0xa3   : > { %v738_v48 = vpop.permute.xlu0 %737  ;;  %v2816_v49 = vpop.permute.xlu1 %2815 }
  0xa4   : > { %v741_v50 = vsel %vm739_vm5, %v2813_v42, %v738_v48  ;;  %v2818_v52 = vunpack.i.h.bf16 %v2816_v49  ;;  %v2817_v53 = vunpack.i.l.bf16 %v2816_v49  ;;  %v2841_v17 = vpop.permute.xlu2 %2840 }
  0xa5   : > { %2638 = vmatmul.msk.f32.vlgmr.msra.gmra.mxu2 %vm364_vm0, %v2636_v41  ;;  %783 = vmatpush.msra.mxu0 %v741_v50  ;;  %v2843_v29 = vunpack.i.h.bf16 %v2841_v17  ;;  %v2842_v30 = vunpack.i.l.bf16 %v2841_v17  ;;  %v2672_v50 = vld [vmem:[%s3386_s0 + $0x60] sm:$0xff] }
  0xa6   : > { %v821_v54 = vsel %vm819_vm6, %v2818_v52, %v818_v47  ;;  %v820_v55 = vsel %vm819_vm6, %v2817_v53, %v2818_v52 }
  0xa7   : > { %2637 = vmatmul.msk.f32.vlgmr.msra.gmra.mxu1 %vm364_vm0, %v2636_v41  ;;  %2645 = vmatmul.msk.f32.vlgmr.msrb.gmra.mxu3 %vm364_vm0, %v2644_v51  ;;  %v1291_v34 = vsel %vm579_vm3, %v2842_v30, %v2843_v29 }
  0xa8   : > { %803 = vmatpush.msra.mxu1 %v738_v48  ;;  %843 = vmatpush.msra.mxu2 %v820_v55  ;;  %v2680_v55 = vld [vmem:[%s3386_s0 + $0x70] sm:$0xff] }
  0xa9   : > { %863 = vmatpush.msra.mxu3 %v821_v54  ;;  %2641 = vmatmul.msk.f32.vlgmr.msrb.gmra.mxu0 %vm364_vm0, %v2640_v57 }
  0xaa   : > { %883 = vmatpush.msrb.mxu0 %v818_v47 }
  0xab   : > { %v2821_v58 = vpop.permute.xlu0 %2820  ;;  %v894_v59 = vpop.permute.xlu1 %893 }
  0xac   : > { %v2823_v61 = vunpack.i.h.bf16 %v2821_v58  ;;  %v2822_v62 = vunpack.i.l.bf16 %v2821_v58  ;;  %v1369_v24 = vpop.permute.xlu2 %1368 }
  0xad   : > { %2643 = vmatmul.msk.f32.vlgmr.msrb.gmra.mxu2 %vm364_vm0, %v2640_v57 }
  0xae   : > { %v900_v1 = vsel %vm899_vm7, %v894_v59, %v2822_v62  ;;  %963 = vmatpush.msrb.mxu3 %v2823_v61  ;;  %v901_v2 = vsel %vm899_vm7, %v2822_v62, %v2823_v61 }
  0xaf   : > { %2642 = vmatmul.msk.f32.vlgmr.msrb.gmra.mxu1 %vm364_vm0, %v2640_v57  ;;  %2650 = vmatmul.msk.f32.vlgmr.msra.gmra.mxu3 %vm364_vm0, %v2648_v60 }
  0xb0   : > { %923 = vmatpush.msrb.mxu1 %v900_v1  ;;  %943 = vmatpush.msrb.mxu2 %v901_v2 }
  0xb1   : > { %1074 = vmatpush.msra.mxu3 %v3063_v5  ;;  %2646 = vmatmul.msk.f32.vlgmr.msra.gmra.mxu0 %vm364_vm0, %v2644_v51 }
  0xb2   : > { %1003 = vmatpush.msra.mxu0 %v980_v3 }
  0xb3   : > { %v978_v7 = vpop.permute.xlu0 %977  ;;  %v2831_v9 = vpop.permute.xlu1 %2830 }
  0xb4   : > { %v2833_v13 = vunpack.i.h.bf16 %v2831_v9  ;;  %v981_v15 = vsel %vm979_vm8, %v2828_v63, %v978_v7  ;;  %v2832_v5 = vunpack.i.l.bf16 %v2831_v9  ;;  %v2856_v39 = vpop.permute.xlu2 %2855 }
  0xb5   : > { %2649 = vmatmul.msk.f32.vlgmr.msra.gmra.mxu2 %vm364_vm0, %v2648_v60  ;;  %v2858_v46 = vunpack.i.h.bf16 %v2856_v39 }
  0xb6   : > { %1043 = vmatpush.msra.mxu2 %v978_v7  ;;  %v1134_v16 = vsel %vm358_vm1, %v2833_v13, %v1132_v4  ;;  %v1133_v18 = vsel %vm358_vm1, %v2832_v5, %v2833_v13  ;;  %v2692_v7 = vld [vmem:[%s3386_s0 + $0x88] sm:$0xff] }
  0xb7   : > { %2647 = vmatmul.msk.f32.vlgmr.msra.gmra.mxu1 %vm364_vm0, %v2644_v51  ;;  %2655 = vmatmul.msk.f32.vlgmr.msrb.gmra.mxu3 %vm364_vm0, %v2652_v12  ;;  %v2857_v51 = vunpack.i.l.bf16 %v2856_v39 }
  0xb8   : > { %1023 = vmatpush.msra.mxu1 %v981_v15  ;;  %1176 = vmatpush.msrb.mxu3 %v1134_v16 }
  0xb9   : > { %2651 = vmatmul.msk.f32.vlgmr.msrb.gmra.mxu0 %vm364_vm0, %v2648_v60  ;;  %v1529_v54 = vsel %vm819_vm6, %v2857_v51, %v2858_v46 }
  0xba   : > { %1094 = vmatpush.msrb.mxu0 %v3065_v6  ;;  %v2656_v6 = vld [vmem:[%s3386_s0 + $0x40] sm:$0xff] }
  0xbb   : > { %v1207_v19 = vpop.permute.xlu1 %1206  ;;  %v2836_v20 = vpop.permute.xlu0 %2835 }
  0xbc   : > { %v2838_v22 = vunpack.i.h.bf16 %v2836_v20  ;;  %v2837_v23 = vunpack.i.l.bf16 %v2836_v20  ;;  %v2866_v49 = vpop.permute.xlu2 %2865 }
  0xbd   : > { %2654 = vmatmul.msk.f32.vlgmr.msrb.gmra.mxu2 %vm364_vm0, %v2652_v12  ;;  %v2868_v52 = vunpack.i.h.bf16 %v2866_v49  ;;  %v2867_v53 = vunpack.i.l.bf16 %v2866_v49 }
  0xbe   : > { %1156 = vmatpush.msrb.mxu2 %v1133_v18  ;;  %v1213_v25 = vsel %vm499_vm2, %v2837_v23, %v2838_v22  ;;  %v2696_v18 = vld [vmem:[%s3386_s0 + $0x90] sm:$0xff] }
  0xbf   : > { %2653 = vmatmul.msk.f32.vlgmr.msrb.gmra.mxu1 %vm364_vm0, %v2652_v12  ;;  %2661 = vmatmul.msk.f32.vlgmr.msra.gmra.mxu3 %vm364_vm0, %v2660_v21  ;;  %v1686_v59 = vsel %vm979_vm8, %v2867_v53, %v2868_v52 }
  0xc0   : > { %1114 = vmatpush.msrb.mxu1 %v3073_v8  ;;  %1275 = vmatpush.msra.mxu3 %v2838_v22  ;;  %v1212_v8 = vsel %vm499_vm2, %v1207_v19, %v2837_v23 }
  0xc1   : > { %2657 = vmatmul.msk.f32.vlgmr.msra.gmra.mxu0 %vm364_vm0, %v2656_v6 }
  0xc2   : > { %1196 = vmatpush.msra.mxu0 %v1132_v4 }
  0xc3   : > { %v1290_v26 = vpop.permute.xlu1 %1289  ;;  %v2846_v27 = vpop.permute.xlu0 %2845 }
  0xc4   : > { %v2848_v31 = vunpack.i.h.bf16 %v2846_v27  ;;  %v2847_v32 = vunpack.i.l.bf16 %v2846_v27  ;;  %v1292_v40 = vsel %vm579_vm3, %v2843_v29, %v1290_v26  ;;  %v2871_v63 = vpop.permute.xlu2 %2870 }
  0xc5   : > { %2659 = vmatmul.msk.f32.vlgmr.msra.gmra.mxu2 %vm364_vm0, %v2656_v6  ;;  %v2873_v9 = vunpack.i.h.bf16 %v2871_v63  ;;  %v2872_v13 = vunpack.i.l.bf16 %v2871_v63 }
  0xc6   : > { %1255 = vmatpush.msra.mxu2 %v1213_v25  ;;  %v1370_v33 = vsel %vm659_vm4, %v2847_v32, %v2848_v31  ;;  %v1371_v43 = vsel %vm659_vm4, %v2848_v31, %v1369_v24 }
  0xc7   : > { %2658 = vmatmul.msk.f32.vlgmr.msra.gmra.mxu1 %vm364_vm0, %v2656_v6  ;;  %2666 = vmatmul.msk.f32.vlgmr.msrb.gmra.mxu3 %vm364_vm0, %v2664_v28 }
  0xc8   : > { %1235 = vmatpush.msra.mxu1 %v1212_v8  ;;  %1393 = vmatpush.msrb.mxu3 %v1370_v33  ;;  %v2708_v8 = vld [vmem:[%s3386_s0 + $0xa8] sm:$0xff] }
  0xc9   : > { %2662 = vmatmul.msk.f32.vlgmr.msrb.gmra.mxu0 %vm364_vm0, %v2660_v21 }
  0xca   : > { %1314 = vmatpush.msrb.mxu0 %v1291_v34 }
  0xcb   : > { %v2851_v35 = vpop.permute.xlu0 %2850  ;;  %v1448_v36 = vpop.permute.xlu1 %1447 }
  0xcc   : > { %v2853_v38 = vunpack.i.h.bf16 %v2851_v35  ;;  %v2852_v42 = vunpack.i.l.bf16 %v2851_v35  ;;  %v2881_v12 = vpop.permute.xlu2 %2880  ;;  %v2704_v35 = vld [vmem:[%s3386_s0 + $0xa0] sm:$0xff] }
  0xcd   : > { %2665 = vmatmul.msk.f32.vlgmr.msrb.gmra.mxu2 %vm364_vm0, %v2664_v28  ;;  %v2883_v5 = vunpack.i.h.bf16 %v2881_v12  ;;  %v2882_v17 = vunpack.i.l.bf16 %v2881_v12 }
  0xce   : > { %1354 = vmatpush.msrb.mxu2 %v1290_v26  ;;  %v1450_v41 = vsel %vm739_vm5, %v2853_v38, %v1448_v36  ;;  %v1449_v44 = vsel %vm739_vm5, %v2852_v42, %v2853_v38  ;;  %v2700_v26 = vld [vmem:[%s3386_s0 + $0x98] sm:$0xff] }
  0xcf   : > { %2663 = vmatmul.msk.f32.vlgmr.msrb.gmra.mxu1 %vm364_vm0, %v2660_v21  ;;  %2671 = vmatmul.msk.f32.vlgmr.msra.gmra.mxu3 %vm364_vm0, %v2668_v37  ;;  %v1997_v22 = vsel %vm579_vm3, %v2882_v17, %v2883_v5 }
  0xd0   : > { %1334 = vmatpush.msrb.mxu1 %v1292_v40  ;;  %1492 = vmatpush.msra.mxu3 %v1450_v41  ;;  %v448_v41 = vpop.f32.mrf.mxu3 }
  0xd1   : > { %2667 = vmatmul.msk.f32.vlgmr.msra.gmra.mxu0 %vm364_vm0, %v2664_v28 }
  0xd2   : > { %1413 = vmatpush.msra.mxu0 %v1371_v43  ;;  %v2712_v43 = vld [vmem:[%s3386_s0 + $0xb0] sm:$0xff] }
  0xd3   : > { %v1523_v47 = vpop.permute.xlu0 %1522  ;;  %v2861_v48 = vpop.permute.xlu1 %2860 }
  0xd4   : > { %v2863_v56 = vunpack.i.h.bf16 %v2861_v48  ;;  %v2862_v57 = vunpack.i.l.bf16 %v2861_v48  ;;  %v1528_v58 = vsel %vm819_vm6, %v1523_v47, %v2857_v51  ;;  %v2886_v6 = vpop.permute.xlu2 %2885 }
  0xd5   : > { %2670 = vmatmul.msk.f32.vlgmr.msra.gmra.mxu2 %vm364_vm0, %v2668_v37  ;;  %v2888_v23 = vunpack.i.h.bf16 %v2886_v6  ;;  %v2887_v30 = vunpack.i.l.bf16 %v2886_v6 }
  0xd6   : > { %1472 = vmatpush.msra.mxu2 %v1449_v44  ;;  %v1607_v62 = vsel %vm899_vm7, %v2862_v57, %v2863_v56 }
  0xd7   : > { %2669 = vmatmul.msk.f32.vlgmr.msra.gmra.mxu1 %vm364_vm0, %v2668_v37  ;;  %2677 = vmatmul.msk.f32.vlgmr.msrb.gmra.mxu3 %vm364_vm0, %v2676_v45  ;;  %v2076_v32 = vsel %vm659_vm4, %v2887_v30, %v2888_v23 }
  0xd8   : > { %1433 = vmatpush.msra.mxu1 %v1369_v24  ;;  %1591 = vmatpush.msrb.mxu3 %v2858_v46 }
  0xd9   : > { %2673 = vmatmul.msk.f32.vlgmr.msrb.gmra.mxu0 %vm364_vm0, %v2672_v50 }
  0xda   : > { %1512 = vmatpush.msrb.mxu0 %v1448_v36 }
  0xdb   : > { %v1606_v60 = vpop.permute.xlu0 %1605  ;;  %v1685_v61 = vpop.permute.xlu1 %1684 }
  0xdc   : > { %v1608_v1 = vsel %vm899_vm7, %v2863_v56, %v1606_v60  ;;  %v1687_v4 = vsel %vm979_vm8, %v2868_v52, %v1685_v61  ;;  %v2150_v29 = vpop.permute.xlu2 %2149 }
  0xdd   : > { %2675 = vmatmul.msk.f32.vlgmr.msrb.gmra.mxu2 %vm364_vm0, %v2672_v50 }
  0xde   : > { %1571 = vmatpush.msrb.mxu2 %v1529_v54 }
  0xdf   : > { %2674 = vmatmul.msk.f32.vlgmr.msrb.gmra.mxu1 %vm364_vm0, %v2672_v50  ;;  %2682 = vmatmul.msk.f32.vlgmr.msra.gmra.mxu3 %vm364_vm0, %v2680_v55 }
  0xe0   : > { %1551 = vmatpush.msrb.mxu1 %v1528_v58  ;;  %1709 = vmatpush.msra.mxu3 %v1686_v59 }
  0xe1   : > { %2678 = vmatmul.msk.f32.vlgmr.msra.gmra.mxu0 %vm364_vm0, %v2676_v45 }
  0xe2   : > { %1630 = vmatpush.msra.mxu0 %v1607_v62 }
  0xe3   : > { %v1834_v2 = vpop.permute.xlu0 %1833  ;;  %v2876_v3 = vpop.permute.xlu1 %2875 }
  0xe4   : > { %v2878_v19 = vunpack.i.h.bf16 %v2876_v3  ;;  %v2877_v20 = vunpack.i.l.bf16 %v2876_v3  ;;  %v1839_v21 = vsel %vm358_vm1, %v1834_v2, %v2872_v13  ;;  %v2233_v37 = vpop.permute.xlu2 %2232 }
  0xe5   : > { %2681 = vmatmul.msk.f32.vlgmr.msra.gmra.mxu2 %vm364_vm0, %v2680_v55 }
  0xe6   : > { %1670 = vmatpush.msra.mxu2 %v1606_v60 }
  0xe7   : > { %2679 = vmatmul.msk.f32.vlgmr.msra.gmra.mxu1 %vm364_vm0, %v2676_v45  ;;  %2687 = vmatmul.msk.f32.vlgmr.msrb.gmra.mxu3 %vm364_vm0, %v2684_v0 }
  0xe8   : > { %1650 = vmatpush.msra.mxu1 %v1608_v1  ;;  %1800 = vmatpush.msrb.mxu3 %v3104_v10  ;;  %v2688_v10 = vld [vmem:[%s3386_s0 + $0x80] sm:$0xff] }
  0xe9   : > { %2683 = vmatmul.msk.f32.vlgmr.msrb.gmra.mxu0 %vm364_vm0, %v2680_v55  ;;  %v2716_v55 = vld [vmem:[%s3386_s0 + $0xb8] sm:$0xff]  ;;  %v2463_v1 = vld [vmem:[%s3387_s1] sm:$0xff] }
  0xea   : > { %1729 = vmatpush.msrb.mxu0 %v1687_v4 }
  0xeb   : > { %v1917_v15 = vpop.permute.xlu0 %1916  ;;  %v1996_v16 = vpop.permute.xlu1 %1995 }
  0xec   : > { %v1919_v27 = vsel %vm499_vm2, %v2878_v19, %v1917_v15  ;;  %v1998_v31 = vsel %vm579_vm3, %v2883_v5, %v1996_v16  ;;  %v2391_v53 = vpop.permute.xlu2 %2390 }
  0xed   : > { %2686 = vmatmul.msk.f32.vlgmr.msrb.gmra.mxu2 %vm364_vm0, %v2684_v0 }
  0xee   : > { %1780 = vmatpush.msrb.mxu2 %v3106_v11  ;;  %v1840_v11 = vsel %vm358_vm1, %v2872_v13, %v2873_v9  ;;  %v2720_v13 = vld [vmem:[%s3386_s0 + $0xc0] sm:$0xff] }
  0xef   : > { %2685 = vmatmul.msk.f32.vlgmr.msrb.gmra.mxu1 %vm364_vm0, %v2684_v0  ;;  %2693 = vmatmul.msk.f32.vlgmr.msra.gmra.mxu3 %vm364_vm0, %v2692_v7  ;;  %v2958_v0 = vmov 0  }
  0xf0   : > { %1749 = vmatpush.msrb.mxu1 %v1685_v61  ;;  %1902 = vmatpush.msra.mxu3 %v2873_v9  ;;  %v2724_v9 = vld [vmem:[%s3386_s0 + $0xc8] sm:$0xff] }
  0xf1   : > { %2689 = vmatmul.msk.f32.vlgmr.msra.gmra.mxu0 %vm364_vm0, %v2688_v10  ;;  %2909 = vset.pattern.permute.xlu0 %v2958_v0 }
  0xf2   : > { %1820 = vmatpush.msra.mxu0 %v3121_v14  ;;  %v1918_v14 = vsel %vm499_vm2, %v2877_v20, %v2878_v19  ;;  %2466 = vperm.xlu0 %2909, %v2463_v1   ;;  %v2728_v19 = vld [vmem:[%s3386_s0 + $0xd0] sm:$0xff] }
  0xf3   : > { %v2075_v24 = vpop.permute.xlu0 %2074  ;;  %v2891_v25 = vpop.permute.xlu1 %2890 }
  0xf4   : > { %v2077_v28 = vsel %vm659_vm4, %v2888_v23, %v2075_v24  ;;  %v2893_v33 = vunpack.i.h.bf16 %v2891_v25  ;;  %v2892_v36 = vunpack.i.l.bf16 %v2891_v25 }
  0xf5   : > { %2691 = vmatmul.msk.f32.vlgmr.msra.gmra.mxu2 %vm364_vm0, %v2688_v10 }
  0xf6   : > { %1882 = vmatpush.msra.mxu2 %v1840_v11  ;;  %v2156_v42 = vsel %vm739_vm5, %v2892_v36, %v2893_v33  ;;  %v2155_v47 = vsel %vm739_vm5, %v2150_v29, %v2892_v36 }
  0xf7   : > { %2690 = vmatmul.msk.f32.vlgmr.msra.gmra.mxu1 %vm364_vm0, %v2688_v10  ;;  %2698 = vmatmul.msk.f32.vlgmr.msrb.gmra.mxu3 %vm364_vm0, %v2696_v18 }
  0xf8   : > { %1862 = vmatpush.msra.mxu1 %v1839_v21  ;;  %2020 = vmatpush.msrb.mxu3 %v1997_v22 }
  0xf9   : > { %2694 = vmatmul.msk.f32.vlgmr.msrb.gmra.mxu0 %vm364_vm0, %v2692_v7 }
  0xfa   : > { %1941 = vmatpush.msrb.mxu0 %v1918_v14 }
  0xfb   : > { %v2901_v34 = vpop.permute.xlu1 %2900  ;;  %v2896_v38 = vpop.permute.xlu0 %2895 }
  0xfc   : > { %v2903_v39 = vunpack.i.h.bf16 %v2901_v34  ;;  %v2902_v40 = vunpack.i.l.bf16 %v2901_v34  ;;  %v2898_v44 = vunpack.i.h.bf16 %v2896_v38  ;;  %v2897_v45 = vunpack.i.l.bf16 %v2896_v38 }
  0xfd   : > { %2697 = vmatmul.msk.f32.vlgmr.msrb.gmra.mxu2 %vm364_vm0, %v2696_v18 }
  0xfe   : > { %1981 = vmatpush.msrb.mxu2 %v1917_v15  ;;  %v2313_v48 = vsel %vm899_vm7, %v2902_v40, %v2903_v39  ;;  %v2234_v51 = vsel %vm819_vm6, %v2897_v45, %v2898_v44  ;;  %v2235_v56 = vsel %vm819_vm6, %v2898_v44, %v2233_v37 }
  0xff   : > { %2695 = vmatmul.msk.f32.vlgmr.msrb.gmra.mxu1 %vm364_vm0, %v2692_v7  ;;  %2703 = vmatmul.msk.f32.vlgmr.msra.gmra.mxu3 %vm364_vm0, %v2700_v26 }
 0x100   : > { %1961 = vmatpush.msrb.mxu1 %v1919_v27  ;;  %2119 = vmatpush.msra.mxu3 %v2077_v28 }
 0x101   : > { %2699 = vmatmul.msk.f32.vlgmr.msra.gmra.mxu0 %vm364_vm0, %v2696_v18 }
 0x102   : > { %2040 = vmatpush.msra.mxu0 %v1998_v31 }
 0x103   : > { %v2312_v57 = vpop.permute.xlu0 %2311 }
 0x104   : > { %v2906_v50 = vpop.permute.xlu1 %2905  ;;  %v2314_v63 = vsel %vm899_vm7, %v2903_v39, %v2312_v57 }
 0x105   : > { %2702 = vmatmul.msk.f32.vlgmr.msra.gmra.mxu2 %vm364_vm0, %v2700_v26  ;;  %v2908_v52 = vunpack.i.h.bf16 %v2906_v50  ;;  %v2907_v60 = vunpack.i.l.bf16 %v2906_v50 }
 0x106   : > { %2099 = vmatpush.msra.mxu2 %v2076_v32 }
 0x107   : > { %2701 = vmatmul.msk.f32.vlgmr.msra.gmra.mxu1 %vm364_vm0, %v2700_v26  ;;  %2709 = vmatmul.msk.f32.vlgmr.msrb.gmra.mxu3 %vm364_vm0, %v2708_v8  ;;  %v2393_v58 = vsel %vm979_vm8, %v2908_v52, %v2391_v53  ;;  %v2392_v4 = vsel %vm979_vm8, %v2907_v60, %v2908_v52 }
 0x108   : > { %2060 = vmatpush.msra.mxu1 %v1996_v16  ;;  %2218 = vmatpush.msrb.mxu3 %v2893_v33 }
 0x109   : > { %2705 = vmatmul.msk.f32.vlgmr.msrb.gmra.mxu0 %vm364_vm0, %v2704_v35 }
 0x10a   : > { %2139 = vmatpush.msrb.mxu0 %v2075_v24 }
 0x10d   : > { %v385_v46 = vpop.f32.mrf.mxu0  ;;  %2707 = vmatmul.msk.f32.vlgmr.msrb.gmra.mxu2 %vm364_vm0, %v2704_v35 }
 0x10e   : > { %v449_v49 = vadd.f32 %v448_v41, %v385_v46  ;;  %2198 = vmatpush.msrb.mxu2 %v2156_v42 }
 0x10f   : > { %2706 = vmatmul.msk.f32.vlgmr.msrb.gmra.mxu1 %vm364_vm0, %v2704_v35  ;;  %2714 = vmatmul.msk.f32.vlgmr.msra.gmra.mxu3 %vm364_vm0, %v2712_v43 }
 0x110   : > { %2178 = vmatpush.msrb.mxu1 %v2155_v47  ;;  %2336 = vmatpush.msra.mxu3 %v2313_v48 }
 0x111   : > { %2710 = vmatmul.msk.f32.vlgmr.msra.gmra.mxu0 %vm364_vm0, %v2708_v8 }
 0x112   : > { %2257 = vmatpush.msra.mxu0 %v2234_v51 }
 0x114   : > { %v405_v54 = vpop.f32.mrf.mxu1 }
 0x115   : > { %2713 = vmatmul.msk.f32.vlgmr.msra.gmra.mxu2 %vm364_vm0, %v2712_v43 }
 0x116   : > { %2297 = vmatpush.msra.mxu2 %v2233_v37  ;;  %v468_v59 = vpop.f32.mrf.mxu0 }
 0x117   : > { %2711 = vmatmul.msk.f32.vlgmr.msra.gmra.mxu1 %vm364_vm0, %v2708_v8  ;;  %2719 = vmatmul.msk.f32.vlgmr.msrb.gmra.mxu3 %vm364_vm0, %v2716_v55  ;;  %v469_v61 = vadd.f32 %v468_v59, %v405_v54 }
 0x118   : > { %v425_v62 = vpop.f32.mrf.mxu2  ;;  %2277 = vmatpush.msra.mxu1 %v2235_v56  ;;  %2435 = vmatpush.msrb.mxu3 %v2393_v58 }
 0x119   : > { %2715 = vmatmul.msk.f32.vlgmr.msrb.gmra.mxu0 %vm364_vm0, %v2712_v43 }
 0x11a   : > { %v545_v2 = vpop.f32.mrf.mxu3  ;;  %2356 = vmatpush.msrb.mxu0 %v2314_v63 }
 0x11b   : > { %v569_v3 = vadd.f32 %v545_v2, %v469_v61 }
 0x11c   : > { %v488_v7 = vpop.f32.mrf.mxu1 }
 0x11d   : > { %v489_v12 = vadd.f32 %v488_v7, %v425_v62  ;;  %2718 = vmatmul.msk.f32.vlgmr.msrb.gmra.mxu2 %vm364_vm0, %v2716_v55 }
 0x11e   : > { %2415 = vmatpush.msrb.mxu2 %v2392_v4  ;;  %v565_v10 = vpop.f32.mrf.mxu0 }
 0x11f   : > { %2717 = vmatmul.msk.f32.vlgmr.msrb.gmra.mxu1 %vm364_vm0, %v2716_v55  ;;  %2725 = vmatmul.msk.f32.vlgmr.msra.gmra.mxu3 %vm364_vm0, %v2724_v9  ;;  %v570_v15 = vadd.f32 %v565_v10, %v489_v12 }
 0x120   : > { %v525_v16 = vpop.f32.mrf.mxu2  ;;  %2376 = vmatpush.msrb.mxu1 %v2312_v57 }
 0x121   : > { %v568_v5 = vadd.f32 %v525_v16, %v449_v49  ;;  %2721 = vmatmul.msk.f32.vlgmr.msra.gmra.mxu0 %vm364_vm0, %v2720_v13 }
 0x122   : > { %v645_v17 = vpop.f32.mrf.mxu3  ;;  %2455 = vmatpush.msra.mxu0 %v2391_v53 }
 0x123   : > { %v650_v11 = vadd.f32 %v645_v17, %v570_v15 }
 0x124   : > { %v605_v18 = vpop.f32.mrf.mxu1 }
 0x125   : > { %v648_v20 = vadd.f32 %v605_v18, %v568_v5  ;;  %2723 = vmatmul.msk.f32.vlgmr.msra.gmra.mxu2 %vm364_vm0, %v2720_v13 }
 0x126   : > { %v685_v21 = vpop.f32.mrf.mxu0 }
 0x127   : > { %2722 = vmatmul.msk.f32.vlgmr.msra.gmra.mxu1 %vm364_vm0, %v2720_v13  ;;  %2730 = vmatmul.msk.f32.vlgmr.msrb.gmra.mxu3 %vm364_vm0, %v2728_v19  ;;  %v728_v22 = vadd.f32 %v685_v21, %v648_v20 }
 0x128   : > { %v625_v6 = vpop.f32.mrf.mxu2 }
 0x129   : > { %v649_v14 = vadd.f32 %v625_v6, %v569_v3  ;;  %2726 = vmatmul.msk.f32.vlgmr.msrb.gmra.mxu0 %vm364_vm0, %v2724_v9 }
 0x12a   : > { %v765_v23 = vpop.f32.mrf.mxu3 }
 0x12b   : > { %v808_v24 = vadd.f32 %v765_v23, %v728_v22 }
 0x12c   : > { %v705_v25 = vpop.f32.mrf.mxu1 }
 0x12d   : > { %v729_v26 = vadd.f32 %v705_v25, %v649_v14  ;;  %2729 = vmatmul.msk.f32.vlgmr.msrb.gmra.mxu2 %vm364_vm0, %v2728_v19 }
 0x12e   : > { %v785_v27 = vpop.f32.mrf.mxu0 }
 0x12f   : > { %2727 = vmatmul.msk.f32.vlgmr.msrb.gmra.mxu1 %vm364_vm0, %v2724_v9  ;;  %v809_v28 = vadd.f32 %v785_v27, %v729_v26 }
 0x130   : > { %v725_v29 = vpop.f32.mrf.mxu2 }
 0x131   : > { %v730_v30 = vadd.f32 %v725_v29, %v650_v11  ;;  %2731 = vmatmul.msk.f32.vlgmr.msra.gmra.mxu0 %vm364_vm0, %v2728_v19 }
 0x132   : > { %v865_v31 = vpop.f32.mrf.mxu3 }
 0x133   : > { %v889_v32 = vadd.f32 %v865_v31, %v809_v28 }
 0x134   : > { %v805_v8 = vpop.f32.mrf.mxu1 }
 0x135   : > { %v810_v33 = vadd.f32 %v805_v8, %v730_v30 }
 0x136   : > { %v885_v34 = vpop.f32.mrf.mxu0 }
 0x137   : > { %v890_v35 = vadd.f32 %v885_v34, %v810_v33 }
 0x138   : > { %v845_v36 = vpop.f32.mrf.mxu2 }
 0x139   : > { %v888_v37 = vadd.f32 %v845_v36, %v808_v24 }
 0x13a   : > { %v965_v38 = vpop.f32.mrf.mxu3 }
 0x13b   : > { %v970_v39 = vadd.f32 %v965_v38, %v890_v35 }
 0x13c   : > { %v925_v40 = vpop.f32.mrf.mxu1 }
 0x13d   : > { %v968_v41 = vadd.f32 %v925_v40, %v888_v37 }
 0x13e   : > { %v1005_v42 = vpop.f32.mrf.mxu0 }
 0x13f   : > { %v1048_v43 = vadd.f32 %v1005_v42, %v968_v41 }
 0x140   : > { %v945_v44 = vpop.f32.mrf.mxu2 }
 0x141   : > { %v969_v45 = vadd.f32 %v945_v44, %v889_v32 }
 0x142   : > { %v1076_v46 = vpop.f32.mrf.mxu3 }
 0x143   : > { %v1119_v47 = vadd.f32 %v1076_v46, %v1048_v43 }
 0x144   : > { %v1025_v48 = vpop.f32.mrf.mxu1 }
 0x145   : > { %v1049_v49 = vadd.f32 %v1025_v48, %v969_v45 }
 0x146   : > { %v1096_v50 = vpop.f32.mrf.mxu0 }
 0x147   : > { %v1120_v51 = vadd.f32 %v1096_v50, %v1049_v49 }
 0x148   : > { %v1045_v52 = vpop.f32.mrf.mxu2 }
 0x149   : > { %v1050_v53 = vadd.f32 %v1045_v52, %v970_v39 }
 0x14a   : > { %v1178_v54 = vpop.f32.mrf.mxu3 }
 0x14b   : > { %v1202_v55 = vadd.f32 %v1178_v54, %v1120_v51 }
 0x14c   : > { %v1116_v56 = vpop.f32.mrf.mxu1 }
 0x14d   : > { %v1121_v57 = vadd.f32 %v1116_v56, %v1050_v53 }
 0x14e   : > { %v1198_v58 = vpop.f32.mrf.mxu0 }
 0x14f   : > { %v1203_v59 = vadd.f32 %v1198_v58, %v1121_v57 }
 0x150   : > { %v1158_v60 = vpop.f32.mrf.mxu2 }
 0x151   : > { %v1201_v61 = vadd.f32 %v1158_v60, %v1119_v47 }
 0x152   : > { %v1277_v62 = vpop.f32.mrf.mxu3 }
 0x153   : > { %v1282_v26 = vadd.f32 %v1277_v62, %v1203_v59 }
 0x154   : > { %v1237_v63 = vpop.f32.mrf.mxu1 }
 0x155   : > { %v1280_v28 = vadd.f32 %v1237_v63, %v1201_v61 }
 0x156   : > { %v1316_v0 = vpop.f32.mrf.mxu0 }
 0x157   : > { %v1359_v33 = vadd.f32 %v1316_v0, %v1280_v28 }
 0x158   : > { %v1257_v1 = vpop.f32.mrf.mxu2 }
 0x159   : > { %v1281_v6 = vadd.f32 %v1257_v1, %v1202_v55 }
 0x15a   : > { %v1395_v2 = vpop.f32.mrf.mxu3 }
 0x15b   : > { %v1438_v37 = vadd.f32 %v1395_v2, %v1359_v33 }
 0x15c   : > { %v1336_v3 = vpop.f32.mrf.mxu1 }
 0x15d   : > { %v1360_v24 = vadd.f32 %v1336_v3, %v1281_v6 }
 0x15e   : > { %v1415_v4 = vpop.f32.mrf.mxu0 }
 0x15f   : > { %v1439_v29 = vadd.f32 %v1415_v4, %v1360_v24 }
 0x160   : > { %v1356_v7 = vpop.f32.mrf.mxu2 }
 0x161   : > { %v1361_v30 = vadd.f32 %v1356_v7, %v1282_v26 }
 0x162   : > { %v1494_v9 = vpop.f32.mrf.mxu3 }
 0x163   : > { %v1518_v31 = vadd.f32 %v1494_v9, %v1439_v29 }
 0x164   : > { %v1435_v12 = vpop.f32.mrf.mxu1 }
 0x165   : > { %v1440_v34 = vadd.f32 %v1435_v12, %v1361_v30 }
 0x166   : > { %v1514_v10 = vpop.f32.mrf.mxu0 }
 0x167   : > { %v1519_v39 = vadd.f32 %v1514_v10, %v1440_v34 }
 0x168   : > { %v1474_v13 = vpop.f32.mrf.mxu2 }
 0x169   : > { %v1517_v40 = vadd.f32 %v1474_v13, %v1438_v37 }
 0x16a   : > { %v1593_v15 = vpop.f32.mrf.mxu3 }
 0x16b   : > { %v1598_v42 = vadd.f32 %v1593_v15, %v1519_v39 }
 0x16c   : > { %v1553_v16 = vpop.f32.mrf.mxu1 }
 0x16d   : > { %v1596_v45 = vadd.f32 %v1553_v16, %v1517_v40 }
 0x16e   : > { %v1632_v5 = vpop.f32.mrf.mxu0 }
 0x16f   : > { %v1675_v51 = vadd.f32 %v1632_v5, %v1596_v45 }
 0x170   : > { %v1573_v17 = vpop.f32.mrf.mxu2 }
 0x171   : > { %v1597_v35 = vadd.f32 %v1573_v17, %v1518_v31 }
 0x172   : > { %v1711_v11 = vpop.f32.mrf.mxu3 }
 0x173   : > { %v1754_v54 = vadd.f32 %v1711_v11, %v1675_v51 }
 0x174   : > { %v1652_v18 = vpop.f32.mrf.mxu1 }
 0x175   : > { %v1676_v41 = vadd.f32 %v1652_v18, %v1597_v35 }
 0x176   : > { %v1731_v19 = vpop.f32.mrf.mxu0 }
 0x177   : > { %v1755_v46 = vadd.f32 %v1731_v19, %v1676_v41 }
 0x178   : > { %v1672_v20 = vpop.f32.mrf.mxu2 }
 0x179   : > { %v1677_v47 = vadd.f32 %v1672_v20, %v1598_v42 }
 0x17a   : > { %v1802_v21 = vpop.f32.mrf.mxu3 }
 0x17b   : > { %v1826_v49 = vadd.f32 %v1802_v21, %v1755_v46 }
 0x17c   : > { %v1751_v22 = vpop.f32.mrf.mxu1 }
 0x17d   : > { %v1756_v52 = vadd.f32 %v1751_v22, %v1677_v47 }
 0x17e   : > { %v1822_v14 = vpop.f32.mrf.mxu0 }
 0x17f   : > { %v1827_v57 = vadd.f32 %v1822_v14, %v1756_v52  ;;  %v2467_v14 = vpop.permute.xlu0 %2466 }
 0x180   : > { %v1782_v23 = vpop.f32.mrf.mxu2 }
 0x181   : > { %v1825_v58 = vadd.f32 %v1782_v23, %v1754_v54 }
 0x182   : > { %v1904_v25 = vpop.f32.mrf.mxu3 }
 0x183   : > { %v1909_v61 = vadd.f32 %v1904_v25, %v1827_v57 }
 0x184   : > { %v1864_v27 = vpop.f32.mrf.mxu1 }
 0x185   : > { %v1907_v63 = vadd.f32 %v1864_v27, %v1825_v58 }
 0x186   : > { %v1943_v32 = vpop.f32.mrf.mxu0 }
 0x187   : > { %v1986_v7 = vadd.f32 %v1943_v32, %v1907_v63 }
 0x188   : > { %v1884_v8 = vpop.f32.mrf.mxu2 }
 0x189   : > { %v1908_v53 = vadd.f32 %v1884_v8, %v1826_v49 }
 0x18a   : > { %v2022_v36 = vpop.f32.mrf.mxu3 }
 0x18b   : > { %v2065_v13 = vadd.f32 %v2022_v36, %v1986_v7 }
 0x18c   : > { %v1963_v38 = vpop.f32.mrf.mxu1 }
 0x18d   : > { %v1987_v59 = vadd.f32 %v1963_v38, %v1908_v53 }
 0x18e   : > { %v2042_v43 = vpop.f32.mrf.mxu0 }
 0x18f   : > { %v2066_v0 = vadd.f32 %v2042_v43, %v1987_v59 }
 0x190   : > { %v1983_v44 = vpop.f32.mrf.mxu2 }
 0x191   : > { %v1988_v1 = vadd.f32 %v1983_v44, %v1909_v61 }
 0x192   : > { %v2121_v48 = vpop.f32.mrf.mxu3 }
 0x193   : > { %v2145_v2 = vadd.f32 %v2121_v48, %v2066_v0 }
 0x194   : > { %v2062_v50 = vpop.f32.mrf.mxu1 }
 0x195   : > { %v2067_v9 = vadd.f32 %v2062_v50, %v1988_v1 }
 0x196   : > { %v2141_v55 = vpop.f32.mrf.mxu0 }
 0x197   : > { %v2146_v16 = vadd.f32 %v2141_v55, %v2067_v9 }
 0x198   : > { %v2101_v56 = vpop.f32.mrf.mxu2 }
 0x199   : > { %v2144_v5 = vadd.f32 %v2101_v56, %v2065_v13 }
 0x19a   : > { %v2220_v60 = vpop.f32.mrf.mxu3 }
 0x19b   : > { %v2225_v11 = vadd.f32 %v2220_v60, %v2146_v16 }
 0x19c   : > { %v2180_v62 = vpop.f32.mrf.mxu1 }
 0x19d   : > { %v2223_v20 = vadd.f32 %v2180_v62, %v2144_v5 }
 0x19e   : > { %v2259_v3 = vpop.f32.mrf.mxu0 }
 0x19f   : > { %v2302_v25 = vadd.f32 %v2259_v3, %v2223_v20 }
 0x1a0   : > { %v2200_v4 = vpop.f32.mrf.mxu2 }
 0x1a1   : > { %v2224_v12 = vadd.f32 %v2200_v4, %v2145_v2 }
 0x1a2   : > { %v2338_v10 = vpop.f32.mrf.mxu3 }
 0x1a3   : > { %v2381_v28 = vadd.f32 %v2338_v10, %v2302_v25 }
 0x1a4   : > { %v2279_v15 = vpop.f32.mrf.mxu1 }
 0x1a5   : > { %v2303_v17 = vadd.f32 %v2279_v15, %v2224_v12 }
 0x1a6   : > { %v2358_v18 = vpop.f32.mrf.mxu0 }
 0x1a7   : > { %v2382_v21 = vadd.f32 %v2358_v18, %v2303_v17 }
 0x1a8   : > { %v2299_v19 = vpop.f32.mrf.mxu2 }
 0x1a9   : > { %v2304_v22 = vadd.f32 %v2299_v19, %v2225_v11 }
 0x1aa   : > { %v2437_v6 = vpop.f32.mrf.mxu3 }
 0x1ab   : > { %v2461_v23 = vadd.f32 %v2437_v6, %v2382_v21 }
 0x1ac   : > { %v2378_v24 = vpop.f32.mrf.mxu1 }
 0x1ad   : > { %v2470_v26 = vadd.f32 %v2467_v14, %v2461_v23  ;;  %v2383_v27 = vadd.f32 %v2378_v24, %v2304_v22 }
 0x1ae   : > { %v2457_v30 = vpop.f32.mrf.mxu0 }
 0x1af   : > { %v2473_v29 = vmax.f32 %v2470_v26, 0.0  ;;  %v2462_v31 = vadd.f32 %v2457_v30, %v2383_v27 }
 0x1b0   : > { %v2417_v32 = vpop.f32.mrf.mxu2 }
 0x1b1   : > { %2476 = vst [vmem:[%s342_s12 + $0x8] sm:$0xff] %v2473_v29  ;;  %v2460_v8 = vadd.f32 %v2417_v32, %v2381_v28  ;;  %v2471_v33 = vadd.f32 %v2467_v14, %v2462_v31 }
 0x1b3   : > { %v2469_v34 = vadd.f32 %v2467_v14, %v2460_v8  ;;  %v2474_v35 = vmax.f32 %v2471_v33, 0.0 }
 0x1b5   : > { %v2472_v36 = vmax.f32 %v2469_v34, 0.0  ;;  %2478 = vst.msk [vmem:[%s342_s12 + $0x10] sm:$0xff] %vm2477_vm9, %v2474_v35 }
 0x1b7   : > { %2475 = vst [vmem:[%s342_s12] sm:$0xff] %v2472_v36 }
 0x1b8 PF: > { %s15_s22 = sadd.s32 1, %s2948_s22   ;;  %s3392_s18 = smov %s2940_s20 }
 0x1b9   : > { %p12_p10 = scmp.ge.s32.totalorder %s15_s22, 34   ;;  %s3393_s19 = smov %s2944_s21 }
 0x1ba   : > { %s3394_s20 = smov %s3397_s23  ;;  %s3395_s21 = smov %s3401_s24 }
 0x1bb   :  { %14 = sbr.rel (!%p12_p10) target bundleno = 3 (0x3), region = 102 }

</bundles_post_ra>
